<compile_context>
chip_gen: v6e
topology: v6e:2x2x1
jax: 0.10.0
libtpu: 0.0.40
codegen_flags: <defaults>
</compile_context>

<pallas_src>
import functools
import math

import jax
import jax.numpy as jnp
from jax.experimental import pallas as pl
from jax.experimental.pallas import tpu as pltpu

_LN_EPS = 1e-5          # PyTorch LayerNorm default
_NEG_INF = -1e9         # finite "minus infinity" for masked attention logits


# ----------------------------------------------------------------------------- kernel
def _encoder_stack_kernel(num_heads, eps,
                          bias_ref, x_ref,
                          wqkv_ref, bqkv_ref, wo_ref, bo_ref,
                          ln1w_ref, ln1b_ref,
                          w1_ref, b1_ref, w2_ref, b2_ref,
                          ln2w_ref, ln2b_ref,
                          o_ref, acc_ref):
    layer = pl.program_id(1)
    n_layers = pl.num_programs(1)
    B_tile, S, E = x_ref.shape
    M = B_tile * S
    H = num_heads
    hd = E // H

    # Load the input only for the first layer; afterwards the activation is carried
    # in the f32 VMEM scratch across the (inner, "arbitrary") layer axis.
    @pl.when(layer == 0)
    def _():
        acc_ref[...] = x_ref[...].astype(jnp.float32).reshape(M, E)

    x = acc_ref[...]                                               # [M, E] f32

    # Weight stacks are VMEM-resident for the whole grid; pick this layer's slice.
    wqkv = wqkv_ref[layer]                                         # [E, 3E] bf16
    bqkv = bqkv_ref[layer]                                         # [1, 3E] f32
    wo = wo_ref[layer]                                             # [E, E]  bf16
    bo = bo_ref[layer]                                             # [1, E]  f32

    # ---- multi-head self attention (bf16 matmuls, f32 accumulation) --------------
    # 1/sqrt(hd) is already folded into Wq/bq by the wrapper.
    x16 = x.astype(jnp.bfloat16)
    qkv = jnp.dot(x16, wqkv, preferred_element_type=jnp.float32) + bqkv       # [M, 3E]

    def head_stack(base):
        # Split the lane dim per head and stack on a leading (head, batch) axis.
        return jnp.concatenate(
            [qkv[:, base + h * hd: base + (h + 1) * hd].reshape(B_tile, S, hd)
             for h in range(H)], axis=0).astype(jnp.bfloat16)       # [H*bt, S, hd]

    qh = head_stack(0)
    kh = head_stack(E)
    vh = head_stack(2 * E)

    # Additive bias: [bt,1,S] (pad only) or [bt,S,S]; replicate along the head axis.
    bias_h = jnp.concatenate([bias_ref[...]] * H, axis=0)           # [H*bt, 1|S, S]

    # One batched score / softmax / context pass over all heads (batch dim = H*bt).
    s = jnp.einsum("bqd,bkd->bqk", qh, kh,
                   preferred_element_type=jnp.float32) + bias_h     # [H*bt, S, S]
    s = s - jnp.max(s, axis=-1, keepdims=True)
    p = jnp.exp(s)
    p = p * pl.reciprocal(jnp.sum(p, axis=-1, keepdims=True), approx=False)
    ctx = jnp.einsum("bqk,bkd->bqd", p.astype(jnp.bfloat16), vh,
                     preferred_element_type=jnp.float32)            # [H*bt, S, hd]

    # Re-assemble heads along lanes and do ONE full-K output projection.
    ctx2 = jnp.concatenate(
        [ctx[h * B_tile:(h + 1) * B_tile].reshape(M, hd) for h in range(H)],
        axis=-1)                                                    # [M, E] f32
    attn = jnp.dot(ctx2.astype(jnp.bfloat16), wo,
                   preferred_element_type=jnp.float32) + bo

    def layernorm(z, w, b):
        mu = jnp.mean(z, axis=-1, keepdims=True)
        var = jnp.mean((z - mu) ** 2, axis=-1, keepdims=True)
        return (z - mu) * jax.lax.rsqrt(var + eps) * w + b

    # post-norm (PyTorch default norm_first=False); dropout is identity in eval mode.
    x1 = layernorm(x + attn, ln1w_ref[layer], ln1b_ref[layer])

    # ---- feed forward --------------------------------------------------------------
    h1 = jnp.maximum(
        jnp.dot(x1.astype(jnp.bfloat16), w1_ref[layer],
                preferred_element_type=jnp.float32) + b1_ref[layer], 0.0)
    h2 = jnp.dot(h1.astype(jnp.bfloat16), w2_ref[layer],
                 preferred_element_type=jnp.float32) + b2_ref[layer]
    x2 = layernorm(x1 + h2, ln2w_ref[layer], ln2b_ref[layer])

    acc_ref[...] = x2

    @pl.when(layer == n_layers - 1)
    def _():
        o_ref[...] = x2.reshape(B_tile, S, E).astype(o_ref.dtype)


# ----------------------------------------------------------------------------- wrapper
def _pick_b_tile(B, S, target_rows=2048):
    """Largest divisor of B with bt*S <= target_rows, preferring >=2 grid blocks so the
    'parallel' batch axis can be split across TensorCores (v7x has 2 per chip)."""
    divisors = [d for d in range(1, B + 1) if B % d == 0]
    fits = [d for d in divisors if d * S <= target_rows] or [1]
    multi = [d for d in fits if B // d >= 2]
    return max(multi) if multi else max(fits)


def _vmem_limit_bytes(required_bytes):
    """Scoped VMEM budget derived from actual usage, clamped to the chip's capacity."""
    cap = 64 * 1024 * 1024                       # conservative default (v7x physical VMEM)
    try:
        cap = int(getattr(pltpu.get_tpu_info(), "vmem_capacity_bytes", cap))
    except Exception:
        pass
    budget = (cap * 3) // 4                      # leave headroom for the compiler
    return int(max(min(2 * required_bytes, budget), min(32 * 1024 * 1024, budget)))


def transformer_forward(his_emb, src_key_padding_mask, params, num_heads, src_mask=None):
    """Equivalent of Transformer.forward(his_emb, src_key_padding_mask, src_mask)."""
    B, S, E = his_emb.shape
    assert E % num_heads == 0, "emb_size must be divisible by num_heads"
    hd = E // num_heads
    L = params["wqkv"].shape[0]
    F = params["w1"].shape[2]

    # Only O(B*S) mask data is shipped to the kernel (no [B,S,S] bias) unless an
    # explicit src_mask is given (PyTorch expands it identically per head).
    if src_key_padding_mask.dtype == jnp.bool_:
        pad_bias = jnp.where(src_key_padding_mask, _NEG_INF, 0.0)
    else:
        pad_bias = src_key_padding_mask                     # float masks are additive
    pad_bias = pad_bias.astype(jnp.float32)[:, None, :]     # [B, 1, S]
    if src_mask is not None:
        sm = src_mask
        if sm.dtype == jnp.bool_:
            sm = jnp.where(sm, _NEG_INF, 0.0)               # bool mask -> additive bias
        sm = sm.astype(jnp.float32)
        if sm.ndim == 2:
            sm = sm[None]
        bias = pad_bias + jnp.broadcast_to(sm, (B, S, S))   # [B, S, S]
    else:
        bias = pad_bias                                     # [B, 1, S]

    # Fold the 1/sqrt(hd) attention scale into the Q projection (wrapper-side, once).
    scale = 1.0 / math.sqrt(hd)
    wqkv = params["wqkv"]
    wq_scaled = (wqkv[:, :, :E].astype(jnp.float32) * scale).astype(wqkv.dtype)
    wqkv_s = jnp.concatenate([wq_scaled, wqkv[:, :, E:]], axis=-1)
    bqkv = params["bqkv"]
    bqkv_s = jnp.concatenate([bqkv[:, :, :E] * scale, bqkv[:, :, E:]], axis=-1)

    bt = _pick_b_tile(B, S)
    n_blocks = B // bt

    def resident(arr):   # whole per-layer weight stack stays in VMEM for the entire grid
        return pl.BlockSpec(arr.shape, lambda b, l: (0, 0, 0))

    weight_bytes = sum(int(params[k].size) * params[k].dtype.itemsize for k in params)
    act = bt * S * E
    required = (2 * weight_bytes                                      # resident weights (x2 buffers)
                + 2 * 2 * act * his_emb.dtype.itemsize                # x in + out, double buffered
                + 2 * bt * bias.shape[1] * S * 4                      # bias block
                + act * 4                                             # resident f32 activation
                + 4 * (6 * act + 2 * num_heads * bt * S * S           # qkv + head stacks + scores
                       + act + bt * S * F + 4 * act))                 # ctx / ffn / misc temporaries

    flops = L * (2 * B * S * E * 3 * E + 2 * B * S * E * E
                 + 4 * B * S * S * E + 4 * B * S * E * F)
    cost = pl.CostEstimate(
        flops=int(flops),
        transcendentals=int(L * B * num_heads * S * S),
        bytes_accessed=int(his_emb.size * his_emb.dtype.itemsize * 2
                           + bias.size * 4 + weight_bytes))           # weights DMAed once

    kernel = functools.partial(_encoder_stack_kernel, num_heads, _LN_EPS)
    return pl.pallas_call(
        kernel,
        out_shape=jax.ShapeDtypeStruct((B, S, E), his_emb.dtype),
        grid=(n_blocks, L),
        in_specs=[
            pl.BlockSpec((bt, bias.shape[1], S), lambda b, l: (b, 0, 0)),   # mask bias
            pl.BlockSpec((bt, S, E), lambda b, l: (b, 0, 0)),               # x
            resident(wqkv_s), resident(bqkv_s),                             # in-proj
            resident(params["wo"]), resident(params["bo"]),                 # out-proj
            resident(params["ln1w"]), resident(params["ln1b"]),             # norm1
            resident(params["w1"]), resident(params["b1"]),                 # linear1
            resident(params["w2"]), resident(params["b2"]),                 # linear2
            resident(params["ln2w"]), resident(params["ln2b"]),             # norm2
        ],
        out_specs=pl.BlockSpec((bt, S, E), lambda b, l: (b, 0, 0)),
        scratch_shapes=[pltpu.VMEM((bt * S, E), jnp.float32)],              # resident activation
        compiler_params=pltpu.CompilerParams(
            dimension_semantics=("parallel", "arbitrary"),
            vmem_limit_bytes=_vmem_limit_bytes(required)),
        cost_estimate=cost,
    )(bias, his_emb,
      wqkv_s, bqkv_s, params["wo"], params["bo"],
      params["ln1w"], params["ln1b"],
      params["w1"], params["b1"], params["w2"], params["b2"],
      params["ln2w"], params["ln2b"])


# ----------------------------------------------------------------------------- params
def init_params(key, E, F, L):
    """Per-layer parameters, stacked along a leading layer axis (matmul weights bf16)."""
    def one_layer(k):
        ks = jax.random.split(k, 8)

        def w(kk, shape):                         # weights stored transposed: [in, out]
            bound = 1.0 / math.sqrt(shape[0])
            return jax.random.uniform(kk, shape, jnp.float32, -bound, bound)

        return dict(
            wqkv=w(ks[0], (E, 3 * E)).astype(jnp.bfloat16),
            bqkv=jax.random.uniform(ks[1], (1, 3 * E), jnp.float32, -0.1, 0.1),
            wo=w(ks[2], (E, E)).astype(jnp.bfloat16),
            bo=jax.random.uniform(ks[3], (1, E), jnp.float32, -0.1, 0.1),
            ln1w=jnp.ones((1, E), jnp.float32),
            ln1b=jnp.zeros((1, E), jnp.float32),
            w1=w(ks[4], (E, F)).astype(jnp.bfloat16),
            b1=jax.random.uniform(ks[5], (1, F), jnp.float32, -0.1, 0.1),
            w2=w(ks[6], (F, E)).astype(jnp.bfloat16),
            b2=jax.random.uniform(ks[7], (1, E), jnp.float32, -0.1, 0.1),
            ln2w=jnp.ones((1, E), jnp.float32),
            ln2b=jnp.zeros((1, E), jnp.float32),
        )

    layers = [one_layer(k) for k in jax.random.split(key, L)]
    return {name: jnp.stack([lyr[name] for lyr in layers]) for name in layers[0]}


# ----------------------------------------------------------------------------- pure-JAX reference
def reference_forward(x, pad_mask, params, num_heads):
    B, S, E = x.shape
    hd = E // num_heads
    L = params["wqkv"].shape[0]
    bias = jnp.where(pad_mask[:, None, :], _NEG_INF, 0.0)       # [B,1,S]

    def ln(z, w, b):
        mu = z.mean(-1, keepdims=True)
        var = ((z - mu) ** 2).mean(-1, keepdims=True)
        return (z - mu) / jnp.sqrt(var + _LN_EPS) * w + b

    x = x.astype(jnp.float32)
    for l in range(L):
        wqkv = params["wqkv"][l].astype(jnp.float32)
        wo = params["wo"][l].astype(jnp.float32)
        w1 = params["w1"][l].astype(jnp.float32)
        w2 = params["w2"][l].astype(jnp.float32)
        qkv = x @ wqkv + params["bqkv"][l]
        q, k, v = jnp.split(qkv, 3, axis=-1)
        q = q.reshape(B, S, num_heads, hd).transpose(0, 2, 1, 3)
        k = k.reshape(B, S, num_heads, hd).transpose(0, 2, 1, 3)
        v = v.reshape(B, S, num_heads, hd).transpose(0, 2, 1, 3)
        s = jnp.einsum("bhqd,bhkd->bhqk", q, k) / jnp.sqrt(hd) + bias[:, None]
        a = jax.nn.softmax(s, axis=-1)
        o = jnp.einsum("bhqk,bhkd->bhqd", a, v).transpose(0, 2, 1, 3).reshape(B, S, E)
        o = o @ wo + params["bo"][l]
        x = ln(x + o, params["ln1w"][l], params["ln1b"][l])
        h = jnp.maximum(x @ w1 + params["b1"][l], 0.0) @ w2 + params["b2"][l]
        x = ln(x + h, params["ln2w"][l], params["ln2b"][l])
    return x


# ----------------------------------------------------------------------------- main
if __name__ == "__main__":
    B, S, E, H, L = 2, 8, 32, 4, 2          # batch, seq, emb_size, num_heads, num_layers
    # dropout=0.1 in __init__ is a no-op in eval mode.
    key = jax.random.PRNGKey(0)
    k_x, k_p = jax.random.split(key)

    his_emb = jax.random.normal(k_x, (B, S, E), jnp.float32)
    src_key_padding_mask = jnp.zeros((B, S), jnp.bool_).at[1, S - 2:].set(True)
    params = init_params(k_p, E, E, L)       # dim_feedforward == emb_size in UniSAR

    out = jax.block_until_ready(
        transformer_forward(his_emb, src_key_padding_mask, params, H, src_mask=None))

    ref = reference_forward(his_emb, src_key_padding_mask, params, H)
    err = float(jnp.max(jnp.abs(out - ref)))
    if err > 5e-2:   # bf16 matmul operands vs f32 reference
        raise RuntimeError(f"Pallas output mismatch vs reference, max abs err = {err}")

    print("KERNEL_OK")
</pallas_src>

<mosaic_0001>
module attributes {stable_mosaic.version = 11 : i64} {
  func.func @_encoder_stack_kernel(%arg0: i32, %arg1: i32, %arg2: memref<1x1x8xf32, #tpu.memory_space<vmem>>, %arg3: memref<1x8x32xf32, #tpu.memory_space<vmem>>, %arg4: memref<2x32x96xbf16, #tpu.memory_space<vmem>>, %arg5: memref<2x1x96xf32, #tpu.memory_space<vmem>>, %arg6: memref<2x32x32xbf16, #tpu.memory_space<vmem>>, %arg7: memref<2x1x32xf32, #tpu.memory_space<vmem>>, %arg8: memref<2x1x32xf32, #tpu.memory_space<vmem>>, %arg9: memref<2x1x32xf32, #tpu.memory_space<vmem>>, %arg10: memref<2x32x32xbf16, #tpu.memory_space<vmem>>, %arg11: memref<2x1x32xf32, #tpu.memory_space<vmem>>, %arg12: memref<2x32x32xbf16, #tpu.memory_space<vmem>>, %arg13: memref<2x1x32xf32, #tpu.memory_space<vmem>>, %arg14: memref<2x1x32xf32, #tpu.memory_space<vmem>>, %arg15: memref<2x1x32xf32, #tpu.memory_space<vmem>>, %arg16: memref<1x8x32xf32, #tpu.memory_space<vmem>>, %arg17: memref<8x32xf32, #tpu.memory_space<vmem>>) attributes {dimension_semantics = [#tpu.dimension_semantics<parallel>, #tpu.dimension_semantics<arbitrary>], iteration_bounds = array<i64: 2, 2>, scalar_prefetch = 0 : i64, scratch_operands = 1 : i64, tpu.core_type = #tpu.core_type<tc>, window_params = [{transform_indices = @transform_0, window_bounds = array<i64: 1, 1, 8>}, {transform_indices = @transform_1, window_bounds = array<i64: 1, 8, 32>}, {pipeline_mode = #tpu.pipeline_mode<synchronous>, transform_indices = @transform_2, window_bounds = array<i64: 2, 32, 96>}, {pipeline_mode = #tpu.pipeline_mode<synchronous>, transform_indices = @transform_3, window_bounds = array<i64: 2, 1, 96>}, {pipeline_mode = #tpu.pipeline_mode<synchronous>, transform_indices = @transform_4, window_bounds = array<i64: 2, 32, 32>}, {pipeline_mode = #tpu.pipeline_mode<synchronous>, transform_indices = @transform_5, window_bounds = array<i64: 2, 1, 32>}, {pipeline_mode = #tpu.pipeline_mode<synchronous>, transform_indices = @transform_6, window_bounds = array<i64: 2, 1, 32>}, {pipeline_mode = #tpu.pipeline_mode<synchronous>, transform_indices = @transform_7, window_bounds = array<i64: 2, 1, 32>}, {pipeline_mode = #tpu.pipeline_mode<synchronous>, transform_indices = @transform_8, window_bounds = array<i64: 2, 32, 32>}, {pipeline_mode = #tpu.pipeline_mode<synchronous>, transform_indices = @transform_9, window_bounds = array<i64: 2, 1, 32>}, {pipeline_mode = #tpu.pipeline_mode<synchronous>, transform_indices = @transform_10, window_bounds = array<i64: 2, 32, 32>}, {pipeline_mode = #tpu.pipeline_mode<synchronous>, transform_indices = @transform_11, window_bounds = array<i64: 2, 1, 32>}, {pipeline_mode = #tpu.pipeline_mode<synchronous>, transform_indices = @transform_12, window_bounds = array<i64: 2, 1, 32>}, {pipeline_mode = #tpu.pipeline_mode<synchronous>, transform_indices = @transform_13, window_bounds = array<i64: 2, 1, 32>}, {transform_indices = @transform_14, window_bounds = array<i64: 1, 8, 32>}]} {
    %c0_i32 = arith.constant 0 : i32
    %0 = arith.cmpi eq, %arg1, %c0_i32 : i32
    %1 = arith.extui %0 : i1 to i32
    %c0_i32_0 = arith.constant 0 : i32
    %2 = arith.cmpi ne, %1, %c0_i32_0 : i32
    scf.if %2 {
      %c0_50 = arith.constant 0 : index
      %c0_51 = arith.constant 0 : index
      %c0_52 = arith.constant 0 : index
      %164 = vector.load %arg3[%c0_50, %c0_51, %c0_52] : memref<1x8x32xf32, #tpu.memory_space<vmem>>, vector<1x8x32xf32>
      %165 = vector.shape_cast %164 : vector<1x8x32xf32> to vector<8x32xf32>
      %c0_53 = arith.constant 0 : index
      %c0_54 = arith.constant 0 : index
      %166 = vector.load %arg17[%c0_53, %c0_54] : memref<8x32xf32, #tpu.memory_space<vmem>>, vector<8x32xf32>
      tpu.vector_store %arg17[%c0_53, %c0_54], %165 {strides = array<i32>} : memref<8x32xf32, #tpu.memory_space<vmem>>, vector<8x32xf32>,
    } else {
    }
    %c0 = arith.constant 0 : index
    %c0_1 = arith.constant 0 : index
    %3 = vector.load %arg17[%c0, %c0_1] : memref<8x32xf32, #tpu.memory_space<vmem>>, vector<8x32xf32>
    %4 = arith.index_cast %arg1 : i32 to index
    %c0_2 = arith.constant 0 : index
    %c0_3 = arith.constant 0 : index
    %5 = vector.load %arg4[%4, %c0_2, %c0_3] : memref<2x32x96xbf16, #tpu.memory_space<vmem>>, vector<1x32x96xbf16>
    %6 = vector.shape_cast %5 : vector<1x32x96xbf16> to vector<32x96xbf16>
    %7 = arith.index_cast %arg1 : i32 to index
    %c0_4 = arith.constant 0 : index
    %c0_5 = arith.constant 0 : index
    %8 = vector.load %arg5[%7, %c0_4, %c0_5] : memref<2x1x96xf32, #tpu.memory_space<vmem>>, vector<1x1x96xf32>
    %9 = vector.shape_cast %8 : vector<1x1x96xf32> to vector<1x96xf32>
    %10 = arith.index_cast %arg1 : i32 to index
    %c0_6 = arith.constant 0 : index
    %c0_7 = arith.constant 0 : index
    %11 = vector.load %arg6[%10, %c0_6, %c0_7] : memref<2x32x32xbf16, #tpu.memory_space<vmem>>, vector<1x32x32xbf16>
    %12 = vector.shape_cast %11 : vector<1x32x32xbf16> to vector<32x32xbf16>
    %13 = arith.index_cast %arg1 : i32 to index
    %c0_8 = arith.constant 0 : index
    %c0_9 = arith.constant 0 : index
    %14 = vector.load %arg7[%13, %c0_8, %c0_9] : memref<2x1x32xf32, #tpu.memory_space<vmem>>, vector<1x1x32xf32>
    %15 = vector.shape_cast %14 : vector<1x1x32xf32> to vector<1x32xf32>
    %16 = arith.truncf %3 : vector<8x32xf32> to vector<8x32xbf16>
    %cst = arith.constant dense<0.000000e+00> : vector<8x96xf32>
    %17 = tpu.matmul %16, %6, %cst {dimension_numbers = #tpu.dot_dimension_numbers<[1], [0], [0], [1], [0, 0, 1, 1], [], []>} : vector<8x32xbf16>, vector<32x96xbf16>, vector<8x96xf32> -> vector<8x96xf32>
    %18 = vector.broadcast %9 : vector<1x96xf32> to vector<8x96xf32>
    %19 = arith.addf %17, %18 : vector<8x96xf32>
    %20 = vector.extract_strided_slice %19 {offsets = [0, 0], sizes = [8, 8], strides = [1, 1]} : vector<8x96xf32> to vector<8x8xf32>
    %21 = vector.shape_cast %20 : vector<8x8xf32> to vector<1x8x8xf32>
    %22 = vector.extract_strided_slice %19 {offsets = [0, 8], sizes = [8, 8], strides = [1, 1]} : vector<8x96xf32> to vector<8x8xf32>
    %23 = vector.shape_cast %22 : vector<8x8xf32> to vector<1x8x8xf32>
    %24 = vector.extract_strided_slice %19 {offsets = [0, 16], sizes = [8, 8], strides = [1, 1]} : vector<8x96xf32> to vector<8x8xf32>
    %25 = vector.shape_cast %24 : vector<8x8xf32> to vector<1x8x8xf32>
    %26 = vector.extract_strided_slice %19 {offsets = [0, 24], sizes = [8, 8], strides = [1, 1]} : vector<8x96xf32> to vector<8x8xf32>
    %27 = vector.shape_cast %26 : vector<8x8xf32> to vector<1x8x8xf32>
    %28 = tpu.concatenate %21, %23, %25, %27 in 0 : vector<1x8x8xf32>, vector<1x8x8xf32>, vector<1x8x8xf32>, vector<1x8x8xf32> -> vector<4x8x8xf32>
    %29 = arith.truncf %28 : vector<4x8x8xf32> to vector<4x8x8xbf16>
    %30 = vector.extract_strided_slice %19 {offsets = [0, 32], sizes = [8, 8], strides = [1, 1]} : vector<8x96xf32> to vector<8x8xf32>
    %31 = vector.shape_cast %30 : vector<8x8xf32> to vector<1x8x8xf32>
    %32 = vector.extract_strided_slice %19 {offsets = [0, 40], sizes = [8, 8], strides = [1, 1]} : vector<8x96xf32> to vector<8x8xf32>
    %33 = vector.shape_cast %32 : vector<8x8xf32> to vector<1x8x8xf32>
    %34 = vector.extract_strided_slice %19 {offsets = [0, 48], sizes = [8, 8], strides = [1, 1]} : vector<8x96xf32> to vector<8x8xf32>
    %35 = vector.shape_cast %34 : vector<8x8xf32> to vector<1x8x8xf32>
    %36 = vector.extract_strided_slice %19 {offsets = [0, 56], sizes = [8, 8], strides = [1, 1]} : vector<8x96xf32> to vector<8x8xf32>
    %37 = vector.shape_cast %36 : vector<8x8xf32> to vector<1x8x8xf32>
    %38 = tpu.concatenate %31, %33, %35, %37 in 0 : vector<1x8x8xf32>, vector<1x8x8xf32>, vector<1x8x8xf32>, vector<1x8x8xf32> -> vector<4x8x8xf32>
    %39 = arith.truncf %38 : vector<4x8x8xf32> to vector<4x8x8xbf16>
    %40 = vector.extract_strided_slice %19 {offsets = [0, 64], sizes = [8, 8], strides = [1, 1]} : vector<8x96xf32> to vector<8x8xf32>
    %41 = vector.shape_cast %40 : vector<8x8xf32> to vector<1x8x8xf32>
    %42 = vector.extract_strided_slice %19 {offsets = [0, 72], sizes = [8, 8], strides = [1, 1]} : vector<8x96xf32> to vector<8x8xf32>
    %43 = vector.shape_cast %42 : vector<8x8xf32> to vector<1x8x8xf32>
    %44 = vector.extract_strided_slice %19 {offsets = [0, 80], sizes = [8, 8], strides = [1, 1]} : vector<8x96xf32> to vector<8x8xf32>
    %45 = vector.shape_cast %44 : vector<8x8xf32> to vector<1x8x8xf32>
    %46 = vector.extract_strided_slice %19 {offsets = [0, 88], sizes = [8, 8], strides = [1, 1]} : vector<8x96xf32> to vector<8x8xf32>
    %47 = vector.shape_cast %46 : vector<8x8xf32> to vector<1x8x8xf32>
    %48 = tpu.concatenate %41, %43, %45, %47 in 0 : vector<1x8x8xf32>, vector<1x8x8xf32>, vector<1x8x8xf32>, vector<1x8x8xf32> -> vector<4x8x8xf32>
    %49 = arith.truncf %48 : vector<4x8x8xf32> to vector<4x8x8xbf16>
    %c0_10 = arith.constant 0 : index
    %c0_11 = arith.constant 0 : index
    %c0_12 = arith.constant 0 : index
    %50 = vector.load %arg2[%c0_10, %c0_11, %c0_12] : memref<1x1x8xf32, #tpu.memory_space<vmem>>, vector<1x1x8xf32>
    %51 = tpu.concatenate %50, %50, %50, %50 in 0 : vector<1x1x8xf32>, vector<1x1x8xf32>, vector<1x1x8xf32>, vector<1x1x8xf32> -> vector<4x1x8xf32>
    "tpu.trace_start"() <{level = 10 : i32, message = "bqd,bkd->bqk"}> : () -> ()
    %cst_13 = arith.constant dense<0.000000e+00> : vector<4x8x8xf32>
    %52 = tpu.matmul %29, %39, %cst_13 {dimension_numbers = #tpu.dot_dimension_numbers<[2], [2], [1], [1], [0, 0, 0, 1, 1, 1], [0], [0]>} : vector<4x8x8xbf16>, vector<4x8x8xbf16>, vector<4x8x8xf32> -> vector<4x8x8xf32>
    "tpu.trace_stop"() : () -> ()
    %53 = vector.broadcast %51 : vector<4x1x8xf32> to vector<4x8x8xf32>
    %54 = arith.addf %52, %53 : vector<4x8x8xf32>
    %cst_14 = arith.constant dense<0xFF800000> : vector<4x8xf32>
    %55 = vector.multi_reduction <maximumf>, %54, %cst_14 [2] : vector<4x8x8xf32> to vector<4x8xf32>
    %56 = vector.shape_cast %55 : vector<4x8xf32> to vector<4x8x1xf32>
    %57 = vector.broadcast %56 : vector<4x8x1xf32> to vector<4x8x8xf32>
    %58 = arith.subf %54, %57 : vector<4x8x8xf32>
    %59 = math.exp %58 : vector<4x8x8xf32>
    %cst_15 = arith.constant dense<0.000000e+00> : vector<4x8xf32>
    %60 = vector.multi_reduction <add>, %59, %cst_15 [2] : vector<4x8x8xf32> to vector<4x8xf32>
    %61 = vector.shape_cast %60 : vector<4x8xf32> to vector<4x8x1xf32>
    %62 = tpu.reciprocal %61 : vector<4x8x1xf32> -> vector<4x8x1xf32>
    %63 = vector.broadcast %62 : vector<4x8x1xf32> to vector<4x8x8xf32>
    %64 = arith.mulf %59, %63 : vector<4x8x8xf32>
    %65 = arith.truncf %64 : vector<4x8x8xf32> to vector<4x8x8xbf16>
    "tpu.trace_start"() <{level = 10 : i32, message = "bqk,bkd->bqd"}> : () -> ()
    %cst_16 = arith.constant dense<0.000000e+00> : vector<4x8x8xf32>
    %66 = tpu.matmul %65, %49, %cst_16 {dimension_numbers = #tpu.dot_dimension_numbers<[2], [1], [1], [2], [0, 0, 0, 1, 1, 2], [0], [0]>} : vector<4x8x8xbf16>, vector<4x8x8xbf16>, vector<4x8x8xf32> -> vector<4x8x8xf32>
    "tpu.trace_stop"() : () -> ()
    %67 = vector.extract_strided_slice %66 {offsets = [0, 0, 0], sizes = [1, 8, 8], strides = [1, 1, 1]} : vector<4x8x8xf32> to vector<1x8x8xf32>
    %68 = vector.shape_cast %67 : vector<1x8x8xf32> to vector<8x8xf32>
    %69 = vector.extract_strided_slice %66 {offsets = [1, 0, 0], sizes = [1, 8, 8], strides = [1, 1, 1]} : vector<4x8x8xf32> to vector<1x8x8xf32>
    %70 = vector.shape_cast %69 : vector<1x8x8xf32> to vector<8x8xf32>
    %71 = vector.extract_strided_slice %66 {offsets = [2, 0, 0], sizes = [1, 8, 8], strides = [1, 1, 1]} : vector<4x8x8xf32> to vector<1x8x8xf32>
    %72 = vector.shape_cast %71 : vector<1x8x8xf32> to vector<8x8xf32>
    %73 = vector.extract_strided_slice %66 {offsets = [3, 0, 0], sizes = [1, 8, 8], strides = [1, 1, 1]} : vector<4x8x8xf32> to vector<1x8x8xf32>
    %74 = vector.shape_cast %73 : vector<1x8x8xf32> to vector<8x8xf32>
    %75 = tpu.concatenate %68, %70, %72, %74 in 1 : vector<8x8xf32>, vector<8x8xf32>, vector<8x8xf32>, vector<8x8xf32> -> vector<8x32xf32>
    %76 = arith.truncf %75 : vector<8x32xf32> to vector<8x32xbf16>
    %cst_17 = arith.constant dense<0.000000e+00> : vector<8x32xf32>
    %77 = tpu.matmul %76, %12, %cst_17 {dimension_numbers = #tpu.dot_dimension_numbers<[1], [0], [0], [1], [0, 0, 1, 1], [], []>} : vector<8x32xbf16>, vector<32x32xbf16>, vector<8x32xf32> -> vector<8x32xf32>
    %78 = vector.broadcast %15 : vector<1x32xf32> to vector<8x32xf32>
    %79 = arith.addf %77, %78 : vector<8x32xf32>
    %80 = arith.addf %3, %79 : vector<8x32xf32>
    %81 = arith.index_cast %arg1 : i32 to index
    %c0_18 = arith.constant 0 : index
    %c0_19 = arith.constant 0 : index
    %82 = vector.load %arg8[%81, %c0_18, %c0_19] : memref<2x1x32xf32, #tpu.memory_space<vmem>>, vector<1x1x32xf32>
    %83 = vector.shape_cast %82 : vector<1x1x32xf32> to vector<1x32xf32>
    %84 = arith.index_cast %arg1 : i32 to index
    %c0_20 = arith.constant 0 : index
    %c0_21 = arith.constant 0 : index
    %85 = vector.load %arg9[%84, %c0_20, %c0_21] : memref<2x1x32xf32, #tpu.memory_space<vmem>>, vector<1x1x32xf32>
    %86 = vector.shape_cast %85 : vector<1x1x32xf32> to vector<1x32xf32>
    %cst_22 = arith.constant dense<0.000000e+00> : vector<8xf32>
    %87 = vector.multi_reduction <add>, %80, %cst_22 [1] : vector<8x32xf32> to vector<8xf32>
    %88 = vector.shape_cast %87 : vector<8xf32> to vector<8x1xf32>
    %cst_23 = arith.constant 3.200000e+01 : f32
    %89 = vector.broadcast %cst_23 : f32 to vector<8x1xf32>
    %90 = arith.divf %88, %89 : vector<8x1xf32>
    %91 = vector.broadcast %90 : vector<8x1xf32> to vector<8x32xf32>
    %92 = arith.subf %80, %91 : vector<8x32xf32>
    %93 = arith.mulf %92, %92 : vector<8x32xf32>
    %cst_24 = arith.constant dense<0.000000e+00> : vector<8xf32>
    %94 = vector.multi_reduction <add>, %93, %cst_24 [1] : vector<8x32xf32> to vector<8xf32>
    %95 = vector.shape_cast %94 : vector<8xf32> to vector<8x1xf32>
    %cst_25 = arith.constant 3.200000e+01 : f32
    %96 = vector.broadcast %cst_25 : f32 to vector<8x1xf32>
    %97 = arith.divf %95, %96 : vector<8x1xf32>
    %98 = vector.broadcast %90 : vector<8x1xf32> to vector<8x32xf32>
    %99 = arith.subf %80, %98 : vector<8x32xf32>
    %cst_26 = arith.constant 9.99999974E-6 : f32
    %100 = vector.broadcast %cst_26 : f32 to vector<8x1xf32>
    %101 = arith.addf %97, %100 : vector<8x1xf32>
    %102 = math.rsqrt %101 : vector<8x1xf32>
    %103 = vector.broadcast %102 : vector<8x1xf32> to vector<8x32xf32>
    %104 = arith.mulf %99, %103 : vector<8x32xf32>
    %105 = vector.broadcast %83 : vector<1x32xf32> to vector<8x32xf32>
    %106 = arith.mulf %104, %105 : vector<8x32xf32>
    %107 = vector.broadcast %86 : vector<1x32xf32> to vector<8x32xf32>
    %108 = arith.addf %106, %107 : vector<8x32xf32>
    %109 = arith.truncf %108 : vector<8x32xf32> to vector<8x32xbf16>
    %110 = arith.index_cast %arg1 : i32 to index
    %c0_27 = arith.constant 0 : index
    %c0_28 = arith.constant 0 : index
    %111 = vector.load %arg10[%110, %c0_27, %c0_28] : memref<2x32x32xbf16, #tpu.memory_space<vmem>>, vector<1x32x32xbf16>
    %112 = vector.shape_cast %111 : vector<1x32x32xbf16> to vector<32x32xbf16>
    %cst_29 = arith.constant dense<0.000000e+00> : vector<8x32xf32>
    %113 = tpu.matmul %109, %112, %cst_29 {dimension_numbers = #tpu.dot_dimension_numbers<[1], [0], [0], [1], [0, 0, 1, 1], [], []>} : vector<8x32xbf16>, vector<32x32xbf16>, vector<8x32xf32> -> vector<8x32xf32>
    %114 = arith.index_cast %arg1 : i32 to index
    %c0_30 = arith.constant 0 : index
    %c0_31 = arith.constant 0 : index
    %115 = vector.load %arg11[%114, %c0_30, %c0_31] : memref<2x1x32xf32, #tpu.memory_space<vmem>>, vector<1x1x32xf32>
    %116 = vector.shape_cast %115 : vector<1x1x32xf32> to vector<1x32xf32>
    %117 = vector.broadcast %116 : vector<1x32xf32> to vector<8x32xf32>
    %118 = arith.addf %113, %117 : vector<8x32xf32>
    %cst_32 = arith.constant 0.000000e+00 : f32
    %119 = vector.broadcast %cst_32 : f32 to vector<8x32xf32>
    %120 = arith.maximumf %118, %119 : vector<8x32xf32>
    %121 = arith.truncf %120 : vector<8x32xf32> to vector<8x32xbf16>
    %122 = arith.index_cast %arg1 : i32 to index
    %c0_33 = arith.constant 0 : index
    %c0_34 = arith.constant 0 : index
    %123 = vector.load %arg12[%122, %c0_33, %c0_34] : memref<2x32x32xbf16, #tpu.memory_space<vmem>>, vector<1x32x32xbf16>
    %124 = vector.shape_cast %123 : vector<1x32x32xbf16> to vector<32x32xbf16>
    %cst_35 = arith.constant dense<0.000000e+00> : vector<8x32xf32>
    %125 = tpu.matmul %121, %124, %cst_35 {dimension_numbers = #tpu.dot_dimension_numbers<[1], [0], [0], [1], [0, 0, 1, 1], [], []>} : vector<8x32xbf16>, vector<32x32xbf16>, vector<8x32xf32> -> vector<8x32xf32>
    %126 = arith.index_cast %arg1 : i32 to index
    %c0_36 = arith.constant 0 : index
    %c0_37 = arith.constant 0 : index
    %127 = vector.load %arg13[%126, %c0_36, %c0_37] : memref<2x1x32xf32, #tpu.memory_space<vmem>>, vector<1x1x32xf32>
    %128 = vector.shape_cast %127 : vector<1x1x32xf32> to vector<1x32xf32>
    %129 = vector.broadcast %128 : vector<1x32xf32> to vector<8x32xf32>
    %130 = arith.addf %125, %129 : vector<8x32xf32>
    %131 = arith.addf %108, %130 : vector<8x32xf32>
    %132 = arith.index_cast %arg1 : i32 to index
    %c0_38 = arith.constant 0 : index
    %c0_39 = arith.constant 0 : index
    %133 = vector.load %arg14[%132, %c0_38, %c0_39] : memref<2x1x32xf32, #tpu.memory_space<vmem>>, vector<1x1x32xf32>
    %134 = vector.shape_cast %133 : vector<1x1x32xf32> to vector<1x32xf32>
    %135 = arith.index_cast %arg1 : i32 to index
    %c0_40 = arith.constant 0 : index
    %c0_41 = arith.constant 0 : index
    %136 = vector.load %arg15[%135, %c0_40, %c0_41] : memref<2x1x32xf32, #tpu.memory_space<vmem>>, vector<1x1x32xf32>
    %137 = vector.shape_cast %136 : vector<1x1x32xf32> to vector<1x32xf32>
    %cst_42 = arith.constant dense<0.000000e+00> : vector<8xf32>
    %138 = vector.multi_reduction <add>, %131, %cst_42 [1] : vector<8x32xf32> to vector<8xf32>
    %139 = vector.shape_cast %138 : vector<8xf32> to vector<8x1xf32>
    %cst_43 = arith.constant 3.200000e+01 : f32
    %140 = vector.broadcast %cst_43 : f32 to vector<8x1xf32>
    %141 = arith.divf %139, %140 : vector<8x1xf32>
    %142 = vector.broadcast %141 : vector<8x1xf32> to vector<8x32xf32>
    %143 = arith.subf %131, %142 : vector<8x32xf32>
    %144 = arith.mulf %143, %143 : vector<8x32xf32>
    %cst_44 = arith.constant dense<0.000000e+00> : vector<8xf32>
    %145 = vector.multi_reduction <add>, %144, %cst_44 [1] : vector<8x32xf32> to vector<8xf32>
    %146 = vector.shape_cast %145 : vector<8xf32> to vector<8x1xf32>
    %cst_45 = arith.constant 3.200000e+01 : f32
    %147 = vector.broadcast %cst_45 : f32 to vector<8x1xf32>
    %148 = arith.divf %146, %147 : vector<8x1xf32>
    %149 = vector.broadcast %141 : vector<8x1xf32> to vector<8x32xf32>
    %150 = arith.subf %131, %149 : vector<8x32xf32>
    %cst_46 = arith.constant 9.99999974E-6 : f32
    %151 = vector.broadcast %cst_46 : f32 to vector<8x1xf32>
    %152 = arith.addf %148, %151 : vector<8x1xf32>
    %153 = math.rsqrt %152 : vector<8x1xf32>
    %154 = vector.broadcast %153 : vector<8x1xf32> to vector<8x32xf32>
    %155 = arith.mulf %150, %154 : vector<8x32xf32>
    %156 = vector.broadcast %134 : vector<1x32xf32> to vector<8x32xf32>
    %157 = arith.mulf %155, %156 : vector<8x32xf32>
    %158 = vector.broadcast %137 : vector<1x32xf32> to vector<8x32xf32>
    %159 = arith.addf %157, %158 : vector<8x32xf32>
    %c0_47 = arith.constant 0 : index
    %c0_48 = arith.constant 0 : index
    %160 = vector.load %arg17[%c0_47, %c0_48] : memref<8x32xf32, #tpu.memory_space<vmem>>, vector<8x32xf32>
    tpu.vector_store %arg17[%c0_47, %c0_48], %159 {strides = array<i32>} : memref<8x32xf32, #tpu.memory_space<vmem>>, vector<8x32xf32>,
    %c1_i32 = arith.constant 1 : i32
    %161 = arith.cmpi eq, %arg1, %c1_i32 : i32
    %162 = arith.extui %161 : i1 to i32
    %c0_i32_49 = arith.constant 0 : i32
    %163 = arith.cmpi ne, %162, %c0_i32_49 : i32
    scf.if %163 {
      %164 = vector.shape_cast %159 : vector<8x32xf32> to vector<1x8x32xf32>
      %c0_50 = arith.constant 0 : index
      %c0_51 = arith.constant 0 : index
      %c0_52 = arith.constant 0 : index
      %165 = vector.load %arg16[%c0_50, %c0_51, %c0_52] : memref<1x8x32xf32, #tpu.memory_space<vmem>>, vector<1x8x32xf32>
      tpu.vector_store %arg16[%c0_50, %c0_51, %c0_52], %164 {strides = array<i32>} : memref<1x8x32xf32, #tpu.memory_space<vmem>>, vector<1x8x32xf32>,
    } else {
    }
    return
  }
  func.func @transform_0(%arg0: i32, %arg1: i32) -> (i32, i32, i32) {
    %c0_i32 = arith.constant 0 : i32
    %c0_i32_0 = arith.constant 0 : i32
    %c0_i32_1 = arith.constant 0 : i32
    return %arg0, %c0_i32, %c0_i32_0 : i32, i32, i32
  }
  func.func @transform_1(%arg0: i32, %arg1: i32) -> (i32, i32, i32) {
    %c0_i32 = arith.constant 0 : i32
    %c0_i32_0 = arith.constant 0 : i32
    %c0_i32_1 = arith.constant 0 : i32
    return %arg0, %c0_i32, %c0_i32_0 : i32, i32, i32
  }
  func.func @transform_2(%arg0: i32, %arg1: i32) -> (i32, i32, i32) {
    %c0_i32 = arith.constant 0 : i32
    %c0_i32_0 = arith.constant 0 : i32
    %c0_i32_1 = arith.constant 0 : i32
    %c0_i32_2 = arith.constant 0 : i32
    return %c0_i32, %c0_i32_0, %c0_i32_1 : i32, i32, i32
  }
  func.func @transform_3(%arg0: i32, %arg1: i32) -> (i32, i32, i32) {
    %c0_i32 = arith.constant 0 : i32
    %c0_i32_0 = arith.constant 0 : i32
    %c0_i32_1 = arith.constant 0 : i32
    %c0_i32_2 = arith.constant 0 : i32
    return %c0_i32, %c0_i32_0, %c0_i32_1 : i32, i32, i32
  }
  func.func @transform_4(%arg0: i32, %arg1: i32) -> (i32, i32, i32) {
    %c0_i32 = arith.constant 0 : i32
    %c0_i32_0 = arith.constant 0 : i32
    %c0_i32_1 = arith.constant 0 : i32
    %c0_i32_2 = arith.constant 0 : i32
    return %c0_i32, %c0_i32_0, %c0_i32_1 : i32, i32, i32
  }
  func.func @transform_5(%arg0: i32, %arg1: i32) -> (i32, i32, i32) {
    %c0_i32 = arith.constant 0 : i32
    %c0_i32_0 = arith.constant 0 : i32
    %c0_i32_1 = arith.constant 0 : i32
    %c0_i32_2 = arith.constant 0 : i32
    return %c0_i32, %c0_i32_0, %c0_i32_1 : i32, i32, i32
  }
  func.func @transform_6(%arg0: i32, %arg1: i32) -> (i32, i32, i32) {
    %c0_i32 = arith.constant 0 : i32
    %c0_i32_0 = arith.constant 0 : i32
    %c0_i32_1 = arith.constant 0 : i32
    %c0_i32_2 = arith.constant 0 : i32
    return %c0_i32, %c0_i32_0, %c0_i32_1 : i32, i32, i32
  }
  func.func @transform_7(%arg0: i32, %arg1: i32) -> (i32, i32, i32) {
    %c0_i32 = arith.constant 0 : i32
    %c0_i32_0 = arith.constant 0 : i32
    %c0_i32_1 = arith.constant 0 : i32
    %c0_i32_2 = arith.constant 0 : i32
    return %c0_i32, %c0_i32_0, %c0_i32_1 : i32, i32, i32
  }
  func.func @transform_8(%arg0: i32, %arg1: i32) -> (i32, i32, i32) {
    %c0_i32 = arith.constant 0 : i32
    %c0_i32_0 = arith.constant 0 : i32
    %c0_i32_1 = arith.constant 0 : i32
    %c0_i32_2 = arith.constant 0 : i32
    return %c0_i32, %c0_i32_0, %c0_i32_1 : i32, i32, i32
  }
  func.func @transform_9(%arg0: i32, %arg1: i32) -> (i32, i32, i32) {
    %c0_i32 = arith.constant 0 : i32
    %c0_i32_0 = arith.constant 0 : i32
    %c0_i32_1 = arith.constant 0 : i32
    %c0_i32_2 = arith.constant 0 : i32
    return %c0_i32, %c0_i32_0, %c0_i32_1 : i32, i32, i32
  }
  func.func @transform_10(%arg0: i32, %arg1: i32) -> (i32, i32, i32) {
    %c0_i32 = arith.constant 0 : i32
    %c0_i32_0 = arith.constant 0 : i32
    %c0_i32_1 = arith.constant 0 : i32
    %c0_i32_2 = arith.constant 0 : i32
    return %c0_i32, %c0_i32_0, %c0_i32_1 : i32, i32, i32
  }
  func.func @transform_11(%arg0: i32, %arg1: i32) -> (i32, i32, i32) {
    %c0_i32 = arith.constant 0 : i32
    %c0_i32_0 = arith.constant 0 : i32
    %c0_i32_1 = arith.constant 0 : i32
    %c0_i32_2 = arith.constant 0 : i32
    return %c0_i32, %c0_i32_0, %c0_i32_1 : i32, i32, i32
  }
  func.func @transform_12(%arg0: i32, %arg1: i32) -> (i32, i32, i32) {
    %c0_i32 = arith.constant 0 : i32
    %c0_i32_0 = arith.constant 0 : i32
    %c0_i32_1 = arith.constant 0 : i32
    %c0_i32_2 = arith.constant 0 : i32
    return %c0_i32, %c0_i32_0, %c0_i32_1 : i32, i32, i32
  }
  func.func @transform_13(%arg0: i32, %arg1: i32) -> (i32, i32, i32) {
    %c0_i32 = arith.constant 0 : i32
    %c0_i32_0 = arith.constant 0 : i32
    %c0_i32_1 = arith.constant 0 : i32
    %c0_i32_2 = arith.constant 0 : i32
    return %c0_i32, %c0_i32_0, %c0_i32_1 : i32, i32, i32
  }
  func.func @transform_14(%arg0: i32, %arg1: i32) -> (i32, i32, i32) {
    %c0_i32 = arith.constant 0 : i32
    %c0_i32_0 = arith.constant 0 : i32
    %c0_i32_1 = arith.constant 0 : i32
    return %arg0, %c0_i32, %c0_i32_0 : i32, i32, i32
  }
}

</mosaic_0001>

<bundles_post_ra>
// kernel: tpu_custom_call.1
= control target key start
LH: loop header
LB: loop body
LE: loop exit
PB: predicated region body
PF: predicated region fallthrough
CT: control target
= control target key end

     0   :  { %s2688_s0 = inlined_call_operand.hbm [shape: f32[2,1,8], index: 0, kind: input, shape index: {}]   ;;  %s2689_s1 = inlined_call_operand.hbm [shape: f32[2,8,32], index: 1, kind: input, shape index: {}]   ;;  %s2690_s2 = inlined_call_operand.hbm [shape: bf16[2,32,96], index: 2, kind: input, shape index: {}]   ;;  %s2691_s3 = inlined_call_operand.vmem [shape: f32[2,1,96], index: 3, kind: input, shape index: {}]   ;;  %s2692_s4 = inlined_call_operand.hbm [shape: bf16[2,32,32], index: 4, kind: input, shape index: {}]   ;;  %s2693_s5 = inlined_call_operand.vmem [shape: f32[2,1,32], index: 5, kind: input, shape index: {}]   ;;  %s2694_s6 = inlined_call_operand.vmem [shape: f32[2,1,32], index: 6, kind: input, shape index: {}]   ;;  %s2695_s7 = inlined_call_operand.vmem [shape: f32[2,1,32], index: 7, kind: input, shape index: {}]   ;;  %s2696_s8 = inlined_call_operand.hbm [shape: bf16[2,32,32], index: 8, kind: input, shape index: {}]   ;;  %s2697_s9 = inlined_call_operand.vmem [shape: f32[2,1,32], index: 9, kind: input, shape index: {}]   ;;  %s2698_s10 = inlined_call_operand.hbm [shape: bf16[2,32,32], index: 10, kind: input, shape index: {}]   ;;  %s2699_s11 = inlined_call_operand.vmem [shape: f32[2,1,32], index: 11, kind: input, shape index: {}]   ;;  %s2700_s12 = inlined_call_operand.vmem [shape: f32[2,1,32], index: 12, kind: input, shape index: {}]   ;;  %s2701_s13 = inlined_call_operand.vmem [shape: f32[2,1,32], index: 13, kind: input, shape index: {}]   ;;  %s2702_s14 = inlined_call_operand.hbm [shape: f32[2,8,32], index: 14, kind: output, shape index: {}]  }
   0x1   :  { %2709 = sst [smem:[#allocation29_spill]] %s2688_s0 }
   0x2   :  { %2710 = sst [smem:[#allocation30_spill]] %s2690_s2 }
   0x3   :  { %2711 = sst [smem:[#allocation31_spill]] %s2692_s4 }
   0x4   :  { %2712 = sst [smem:[#allocation32_spill]] %s2696_s8 }
   0x5   :  { %2713 = sst [smem:[#allocation33_spill]] %s2698_s10 }
   0x6   :  { %2714 = sst [smem:[#allocation34_spill]] %s2699_s11 }
   0x7   :  { %2715 = sst [smem:[#allocation35_spill]] %s2700_s12 }
   0x8   :  { %2716 = sst [smem:[#allocation36_spill]] %s2701_s13 }
   0x9   :  { %2717 = sst [smem:[#allocation37_spill]] %s2702_s14 }
   0xa   :  { %19 = vsyncpa [#allocation4], 0 }
   0xb   :  { %21 = vsyncpa [#allocation4 + $0x1], 0 }
   0xc   :  { %22 = vsyncpa [#allocation7], 0 }
   0xd   :  { %24 = vsyncpa [#allocation7 + $0x1], 0 }
   0xe   :  { %25 = vsyncpa [#allocation10], 0 }
   0xf   :  { %26 = vsyncpa [#allocation13], 0 }
  0x10   :  { %27 = vsyncpa [#allocation5], 0 }
  0x11   :  { %29 = vsyncpa [#allocation5 + $0x1], 0  ;;  %s2297_s29 = smov 0   ;;  %s2299_s30 = smov 0  }
  0x12   :  { %s2301_s15 = smov 0   ;;  %s2303_s16 = smov 0  }
  0x13   :  { %s2305_s17 = smov 0   ;;  %s2307_s18 = smov 0  }
  0x14   :  { %s2309_s19 = smov 0   ;;  %s2311_s20 = smov 0  }
  0x15 LB: > { %2718 = sst [smem:[#allocation21_spill]] %s2173_s29  ;;  %s2338_s21 = sadd.s32 4294967295, %s2201_s20   ;;  %s2201_s20 = sphi %s2311_s20, %s35_s20   ;;  %s2197_s19 = sphi %s2309_s19, %s2753_s19   ;;  %s2193_s18 = sphi %s2307_s18, %s2748_s18   ;;  %s2189_s17 = sphi %s2305_s17, %s2752_s17   ;;  %s2185_s16 = sphi %s2303_s16, %s2747_s16   ;;  %s2181_s15 = sphi %s2301_s15, %s2746_s15   ;;  %s2177_s30 = sphi %s2299_s30, %s2751_s30   ;;  %s2173_s29 = sphi %s2297_s29, %s2750_s29  }
  0x16   : > { %2719 = sst [smem:[#allocation22_spill]] %s2181_s15  ;;  %p1597_p0 = scmp.ge.s32.totalorder %s2201_s20, 1 }
  0x17   : > { %2720 = sst [smem:[#allocation23_spill]] %s2189_s17  ;;  %p68_p1 = scmp.eq.s32.totalorder %s2338_s21, 0 }
  0x18   : > { %2721 = sst [smem:[#allocation24_spill]] %s2193_s18  ;;  %p382_p2 = scmp.lt.s32.totalorder %s2201_s20, 5 }
  0x19   : > { %s2203_s23 = smov [#allocation8]   ;;  %s2204_s26 = smov [#allocation9]  }
  0x1a   : > { %p2343_p3 = pnand %p1597_p0, %p382_p2  ;;  %s394_s24 = sshll.u32 %s2203_s23, 4  ;;  %s395_s24 = int_to_ptr.vmem [resolvable:$true] %s394_s24 }
  0x1b   : > { %s410_s27 = sshll.u32 %s2204_s26, 4  ;;  %s2205_s28 = smov [#allocation11]   ;;  %s411_s27 = int_to_ptr.vmem [resolvable:$true] %s410_s27 }
  0x1c   : > { %p1787_p4 = pneg %p2343_p3  ;;  %s432_s14 = sshll.u32 %s2205_s28, 4  ;;  %s433_s14 = int_to_ptr.vmem [resolvable:$true] %s432_s14 }
  0x1d   : > { %s1940_s17 = scalar_lea.vmem %s395_s24, 512  ;;  %p1948_p10 = scmp.lt.s32.totalorder %s395_s24, %s395_s24 }
  0x1e   : > { %p2351_p5 = pnand %p1787_p4, %p68_p1  ;;  %p1941_p7 = scmp.ne.s32.totalorder %s395_s24, %s1940_s17 }
  0x1f   : > { %p1949_p11 = scmp.lt.s32.totalorder %s1940_s17, %s1940_s17 }
  0x20   : > { %p1931_p6 = pneg %p2351_p5 }
  0x21   : > { %p1950_p12 = por %p1949_p11, %p1948_p10 }
  0x22   : > { %p1943_p8 = pnand %p1941_p7, %p1931_p6 }
  0x24   : > { %p1944_p9 = pneg %p1943_p8 }
  0x26   : > { %p1951_p13 = pnand %p1950_p12, %p1944_p9 }
  0x28   : > { %1954 = shalt.err (!%p1951_p13)
}
  0x29   : > { %s2206_s23 = smov 64   ;;  %s2207_s26 = smov 4  }
  0x2a   : > { %s2724_s2 = sld [smem:[#allocation30_spill]]  ;;  %s1966_s12 = scalar_lea.vmem %s411_s27, 512 }
  0x2b   : > { %p1967_p0 = scmp.ne.s32.totalorder %s411_s27, %s1966_s12  ;;  %p1974_p7 = scmp.lt.s32.totalorder %s411_s27, %s411_s27 }
  0x2c   : > { %p1975_p8 = scmp.lt.s32.totalorder %s1966_s12, %s1966_s12 }
  0x2d   : > { %p1969_p2 = pnand %p1967_p0, %p1931_p6 }
  0x2e   : > { %p1976_p9 = por %p1975_p8, %p1974_p7 }
  0x2f   : > { %p1970_p4 = pneg %p1969_p2 }
  0x30   : > { %1790 = dma.hbm_to_vmem [thread:$0]  (!%p2351_p5), %s2724_s2, 512, %s395_s24, [#allocation7], %s2206_s23, %s2206_s23, %s2207_s26  }
  0x31   : > { %p1977_p10 = pnand %p1976_p9, %p1970_p4 }
  0x33   : > { %1980 = shalt.err (!%p1977_p10)
}
  0x34   : > { %s2725_s4 = sld [smem:[#allocation31_spill]]  ;;  %s1992_s13 = scalar_lea.vmem %s433_s14, 512 }
  0x35   : > { %p1993_p11 = scmp.ne.s32.totalorder %s433_s14, %s1992_s13  ;;  %p2000_p0 = scmp.lt.s32.totalorder %s433_s14, %s433_s14 }
  0x36   : > { %p2001_p2 = scmp.lt.s32.totalorder %s1992_s13, %s1992_s13 }
  0x37   : > { %p1995_p12 = pnand %p1993_p11, %p1931_p6 }
  0x38   : > { %p2002_p4 = por %p2001_p2, %p2000_p0 }
  0x39   : > { %p1996_p13 = pneg %p1995_p12 }
  0x3a   : > { %1793 = dma.hbm_to_vmem [thread:$0]  (!%p2351_p5), %s2725_s4, 512, %s411_s27, [#allocation10], %s2206_s23, %s2206_s23, %s2207_s26  }
  0x3b   : > { %p2003_p7 = pnand %p2002_p4, %p1996_p13 }
  0x3d   : > { %2006 = shalt.err (!%p2003_p7)
}
  0x3e   : > { %s2726_s8 = sld [smem:[#allocation32_spill]]  ;;  %s2208_s24 = smov [#allocation12]  }
  0x3f   : > { %s448_s27 = sshll.u32 %s2208_s24, 4  ;;  %s449_s27 = int_to_ptr.vmem [resolvable:$true] %s448_s27 }
  0x40   : > { %s2018_s28 = scalar_lea.vmem %s449_s27, 512  ;;  %p2026_p11 = scmp.lt.s32.totalorder %s449_s27, %s449_s27 }
  0x41   : > { %p2019_p8 = scmp.ne.s32.totalorder %s449_s27, %s2018_s28  ;;  %p2027_p12 = scmp.lt.s32.totalorder %s2018_s28, %s2018_s28 }
  0x43   : > { %p2021_p9 = pnand %p2019_p8, %p1931_p6  ;;  %p2028_p13 = por %p2027_p12, %p2026_p11 }
  0x44   : > { %1796 = dma.hbm_to_vmem [thread:$0]  (!%p2351_p5), %s2726_s8, 512, %s433_s14, [#allocation10], %s2206_s23, %s2206_s23, %s2207_s26  }
  0x45   : > { %p2022_p10 = pneg %p2021_p9 }
  0x47   : > { %p2029_p0 = pnand %p2028_p13, %p2022_p10 }
  0x49   : > { %2032 = shalt.err (!%p2029_p0)
}
  0x4a   : > { %s2727_s10 = sld [smem:[#allocation33_spill]]  ;;  %s1596_s25 = sadd.s32 4294967294, %s2201_s20  }
  0x4b   : > { %s44_s13 = sadd.s32 1, %s2193_s18  ;;  %s47_s11 = sadd.s32 1, %s2197_s19 }
  0x4c   : > { %p45_p6 = scmp.ge.s32.totalorder %s44_s13, 2  ;;  %s54_s12 = sadd.s32 1, %s2181_s15 }
  0x4d   : > { %p61_p2 = scmp.ne.s32.totalorder %s2181_s15, %s2177_s30  ;;  %p62_p4 = scmp.eq.s32.totalorder %s2201_s20, 0 }
  0x4e   : > { %s2755_s13 = smov (%p45_p6, %s44_s13), 0  ;;  %s2757_s11 = smov (!%p45_p6, %s47_s11), %s2197_s19 }
  0x4f   : > { %2728 = sst [smem:[#allocation25_spill]] %s2755_s13  ;;  %p67_p7 = scmp.ne.s32.totalorder %s2177_s30, %s2173_s29 }
  0x50   : > { %1799 = dma.hbm_to_vmem [thread:$0]  (!%p2351_p5), %s2727_s10, 512, %s449_s27, [#allocation13], %s2206_s23, %s2206_s23, %s2207_s26  }
  0x51   : > { %p49_p8 = scmp.ge.s32.totalorder %s2757_s11, 2  ;;  %p369_p9 = scmp.eq.s32.totalorder %s2338_s21, 3 }
  0x52   : > { %p2414_p10 = por %p62_p4, %p61_p2  ;;  %p2420_p5 = por %p68_p1, %p67_p7 }
  0x53   : > { %s2759_s11 = smov (%p49_p8, %s2757_s11), 0  ;;  %p2426_p11 = por %p369_p9, %p61_p2 }
  0x54   : > { %2731 = sst [smem:[#allocation26_spill]] %s2759_s11  ;;  %p375_p12 = scmp.eq.s32.totalorder %s1596_s25, 3 }
  0x55   : > { %s51_s27 = ssub.s32 %s2197_s19, %s2759_s11  ;;  %p1815_p13 = scmp.lt.s32.totalorder %s2201_s20, 4 }
  0x56   : > { %p52_p0 = scmp.eq.s32.totalorder %s51_s27, 0  ;;  %p2433_p6 = por %p375_p12, %p67_p7 }
  0x57   : > { %s471_s14 = sand.u32 1, %s2181_s15   ;;  %s1603_s17 = sshll.u32 %s2197_s19, 4 }
  0x58   : > { %s2733_s28 = scalar_select %p2433_p6, 1, 0 }
  0x59   : > { %s2440_s2 = scalar_select %p52_p0, %s2181_s15, %s54_s12  }
  0x5a   : > { %2734 = sst [smem:[#allocation27_spill]] %s2733_s28  ;;  %s474_s13 = scalar_lea.vmem [#allocation3], %s471_s14 }
  0x5b   : > { %2735 = sst [smem:[#allocation28_spill]] %s2440_s2  ;;  %s481_s18 = sshll.u32 %s474_s13, 4  ;;  %s482_s18 = int_to_ptr.vmem [resolvable:$true] %s481_s18 }
  0x5c   : > { %s2736_s0 = sld [smem:[#allocation29_spill]]  ;;  %p2447_p2 = pnand %p1815_p13, %p2414_p10 }
  0x5d   : > { %s488_s27 = sand.u32 1, %s2201_s20   ;;  %s1604_s11 = sshll.u32 %s471_s14, 3 }
  0x5e   : > { %s472_s28 = scalar_lea.sflag [#allocation4], %s471_s14  ;;  %p2035_p4 = pneg %p2447_p2 }
  0x5f   : > { %s2046_s12 = scalar_lea.vmem %s482_s18, 16  ;;  %s2209_s4 = smov [#allocation3]  }
  0x60   : > { %p2047_p7 = scmp.ne.s32.totalorder %s482_s18, %s2046_s12  ;;  %s2051_s8 = sshll.u32 %s2209_s4, 4  ;;  %s2052_s8 = int_to_ptr.vmem [resolvable:$false] %s2051_s8 }
  0x61   : > { %s2053_s13 = scalar_lea.vmem %s2052_s8, 32  ;;  %p2054_p10 = scmp.lt.s32.totalorder %s482_s18, %s2052_s8 }
  0x62   : > { %s479_s10 = scalar_lea.hbm %s2736_s0, %s1603_s17  ;;  %p2049_p8 = pnand %p2047_p7, %p2035_p4 }
  0x63   : > { %p2055_p12 = scmp.lt.s32.totalorder %s2053_s13, %s2046_s12 }
  0x64   : > { %p2050_p9 = pneg %p2049_p8 }
  0x65   : > { %p2056_p13 = por %p2055_p12, %p2054_p10 }
  0x67   : > { %p2057_p0 = pnand %p2056_p13, %p2050_p9 }
  0x69   : > { %2060 = shalt.err (!%p2057_p0)
}
  0x6a   : > { %1803 = dma.hbm_to_vmem [thread:$0]  (!%p2447_p2), %s479_s10, 16, %s482_s18, %s472_s28  }
  0x6b   : > { %s1605_s23 = sshll.u32 %s2197_s19, 7  ;;  %s492_s2 = scalar_lea.vmem [#allocation6], %s1604_s11 }
  0x6c   : > { %s497_s0 = scalar_lea.hbm %s2689_s1, %s1605_s23  ;;  %s499_s15 = sshll.u32 %s492_s2, 4  ;;  %s500_s15 = int_to_ptr.vmem [resolvable:$true] %s499_s15 }
  0x6d   : > { %s489_s4 = scalar_lea.sflag [#allocation7], %s488_s27  ;;  %s2074_s29 = scalar_lea.vmem %s500_s15, 128 }
  0x6e   : > { %p2075_p7 = scmp.ne.s32.totalorder %s500_s15, %s2074_s29  ;;  %s2210_s12 = smov [#allocation6]  }
  0x6f   : > { %s2079_s8 = sshll.u32 %s2210_s12, 4  ;;  %s2080_s8 = int_to_ptr.vmem [resolvable:$false] %s2079_s8 }
  0x70   : > { %p2077_p8 = pnand %p2075_p7, %p2035_p4  ;;  %s2081_s13 = scalar_lea.vmem %s2080_s8, 256 }
  0x71   : > { %p2082_p10 = scmp.lt.s32.totalorder %s500_s15, %s2080_s8  ;;  %p2083_p12 = scmp.lt.s32.totalorder %s2081_s13, %s2074_s29 }
  0x72   : > { %p2078_p9 = pneg %p2077_p8 }
  0x73   : > { %p2084_p13 = por %p2083_p12, %p2082_p10 }
  0x75   : > { %p2085_p0 = pnand %p2084_p13, %p2078_p9 }
  0x77   : > { %2088 = shalt.err (!%p2085_p0)
}
  0x78   : > { %1806 = dma.hbm_to_vmem [thread:$0]  (!%p2447_p2), %s497_s0, 128, %s500_s15, %s489_s4  }
  0x79   : > { %508 = sbr.rel (%p2343_p3) target bundleno = 2655 (0xa5f), region = 76  ;;  %s2471_s2 = sand.u32 (!%p2343_p3), 1, %s2177_s30  }
  0x7a   : > { %s511_s10 = scalar_lea.sflag (!%p2343_p3), [#allocation4], %s2471_s2  ;;  %s513_s18 = scalar_lea.vmem (!%p2343_p3), [#allocation3], %s2471_s2 }
  0x7e   : > { %2148 = dma.done.wait (%p2420_p5), %s511_s10, 16  }
  0x7f   : > { %2150 = vsyncadd (%p2420_p5), %s511_s10, 4294967280  ;;  %s518_s0 = sand.u32 1, %s2338_s21   ;;  %s1607_s29 = sshll.u32 %s2471_s2, 3 }
  0x80   : > { %s519_s15 = scalar_lea.sflag [#allocation7], %s518_s0  ;;  %s522_s22 = scalar_lea.vmem [#allocation6], %s1607_s29 }
  0x81   : > { %2152 = dma.done.wait (%p2420_p5), %s519_s15, 128  }
  0x82   : > { %2154 = vsyncadd (%p2420_p5), %s519_s15, 4294967168 }
  0x83   : > { %2156 = dma.done.wait (%p68_p1), [#allocation7], 512  }
  0x84   : > { %2158 = vsyncadd (%p68_p1), [#allocation7], 4294966784 }
  0x85   : > { %2160 = dma.done.wait (%p68_p1), [#allocation10], 1024  }
  0x86   : > { %2162 = vsyncadd (%p68_p1), [#allocation10], 4294966272 }
  0x87   : > { %2164 = dma.done.wait (%p68_p1), [#allocation13], 512  }
  0x88   : > { %2166 = vsyncadd (%p68_p1), [#allocation13], 4294966784  ;;  %s2497_s11 = scalar_lea.vmem [#allocation14], %s1607_s29  ;;  %p1613_p3 = scmp.ne.s32.totalorder %s2185_s16, 0 }
  0x8a   : > { %591 = sbr.rel (%p1613_p3) target bundleno = 145 (0x91), region = 104 }
  0x8f   : > { %v592_v0 = vld [vmem:[%s522_s22] sm:$0xff]  ;;  %vm593_vm0 = vcmask 261120  }
  0x90   : > { %594 = vst.msk [vmem:[#allocation2] sm:$0xff] %vm593_vm0, %v592_v0 }
  0x91 PF: > { %s2501_s26 = sshll.u32 %s2185_s16, 4  ;;  %v2211_v1 = vmov 0.0   ;;  %vm2212_vm1 = vmmov 0   ;;  %vm632_vm2 = vcmask 261120   ;;  %s603_s27 = scalar_lea.vmem %s2691_s3, %s2185_s16  ;;  %vm700_vm3 = vcmask 64512  }
  0x92   : > { %1685 = vmatprep.subr.bf16.mxu0 %v2211_v1  ;;  %1689 = vmatprep.mubr.msk.bf16.mxu0 %vm2212_vm1, %v2211_v1  ;;  %s598_s21 = scalar_lea.vmem [#allocation8], %s2501_s26  ;;  %v1617_v6 = vld [vmem:[%s603_s27] ss:$0 sm:$0xff]  ;;  %s2213_s23 = smov 104   ;;  %vm947_vm4 = vcmask 1043456   ;;  %vm1148_vm5 = vcmask 130048  }
  0x93   : > { %v1901_v2 = vld [vmem:[%s598_s21 + $0x8] sm:$0xff]   ;;  %1693 = vmatprep.subr.bf16.mxu1 %v2211_v1  ;;  %1695 = vmatprep.mubr.msk.bf16.mxu1 %vm2212_vm1, %v2211_v1  ;;  %v1902_v3 = vld [vmem:[%s598_s21] sm:$0xff]   ;;  %s2214_s14 = smov 120   ;;  %s2215_s17 = smov 112   ;;  %vm1150_vm6 = vcmask 195584  }
  0x94   : > { %1686 = vmatpush3.bf16.msra.mxu0 %v1901_v2  ;;  %s2216_s4 = smov 96   ;;  %v1621_v27 = vld [vmem:[%s513_s18] ss:$0 sm:$0xff]  ;;  %s2217_s12 = smov 64  }
  0x95   : > { %1687 = vmatprep.subr.bf16.mxu0 %v2211_v1  ;;  %s606_s8 = scalar_lea.vmem [#allocation9], %s2501_s26  ;;  %s2218_s13 = smov 8  }
  0x96   : > { %s2219_s10 = smov 16   ;;  %s2220_s18 = smov 24  }
  0x97   : > { %v2510_v4 = vld [vmem:[#allocation2] sm:$0xff]  ;;  %s611_s15 = scalar_lea.vmem %s2693_s5, %s2185_s16  ;;  %s1249_s22 = scalar_lea.vmem [#allocation11], %s2501_s26 }
  0x98   : > { %v613_v5 = vpack.c.bf16 %v2510_v4, %v2510_v4  ;;  %1688 = vmatpush3.bf16.msra.mxu0 %v1902_v3  ;;  %s1215_s25 = scalar_lea.vmem %s2694_s6, %s2185_s16  ;;  %p1648_p1 = scmp.ne.s32.totalorder %s2185_s16, 1 }
  0x99   : > { %1699 = vmatprep.subr.bf16.mxu0 %v2211_v1 }
  0x9b   : > { %1690 = vmatmul.mubr.msk.bf16.vlgmr.msra.gmra.mxu0 %vm632_vm2, %v613_v5 }
  0x9c   : > { %1701 = vmatprep.mubr.msk.bf16.mxu0 %vm2212_vm1, %v2211_v1 }
 0x15b   : > { %v670_v7 = vpop.f32.mrf.mxu0 }
 0x15c   : > { %v671_v8 = vadd.f32 %v1617_v6, %v670_v7 }
 0x15d   : > { %v1691_v9 = vpop.f32.mrf.mxu0 }
 0x15e   : > { %683 = vrot.lane.b32.xlu1 %v671_v8, %s2213_s23  ;;  %677 = vrot.lane.b32.xlu0 %v671_v8, %s2214_s14  ;;  %v2523_v11 = vpack.c.bf16 %v671_v8, %v671_v8  ;;  %s1217_s14 = scalar_lea.vmem %s2695_s7, %s2185_s16 }
 0x15f   : > { %v673_v10 = vpop.f32.mrf.mxu0 }
 0x161   : > { %v1692_v12 = vpop.f32.mrf.mxu0 }
 0x162   : > { %680 = vrot.lane.b32.xlu0 %v671_v8, %s2215_s17  ;;  %698 = vrot.lane.b32.xlu1 %v2523_v11, %s2216_s4  ;;  %s1320_s17 = scalar_lea.vmem [#allocation12], %s2501_s26 }
 0x1d0   : > { %v684_v13 = vpop.permute.xlu1 %683  ;;  %v678_v14 = vpop.permute.xlu0 %677 }
 0x1d1   : > { %v687_v15 = vpack.c.bf16 %v678_v14, %v678_v14  ;;  %v2526_v18 = vpack.c.bf16 %v684_v13, %v684_v13 }
 0x1d3   : > { %748 = vrot.lane.b32.xlu0 %v687_v15, %s2216_s4 }
 0x1d4   : > { %v681_v16 = vpop.permute.xlu0 %680  ;;  %v699_v17 = vpop.permute.xlu1 %698 }
 0x1d5   : > { %v2528_v19 = vpack.c.bf16 %v681_v16, %v681_v16  ;;  %v705_v20 = vsel %vm700_vm3, %v699_v17, 0 }
 0x1d6   : > { %1694 = vmatpush3.bf16.xpose.msra.mxu1 %v705_v20 }
 0x1d7   : > { %846 = vrot.lane.b32.xlu0 %v2526_v18, %s2216_s4  ;;  %797 = vrot.lane.b32.xlu1 %v2528_v19, %s2216_s4 }
 0x1d8   : > { %1705 = vmatprep.subr.bf16.mxu1 %v2211_v1 }
 0x1dd   : > { %1696 = vmatmul.mubr.msk.bf16.vlgmr.msra.gmra.mxu1 %vm700_vm3, %v2523_v11 }
 0x1de   : > { %1707 = vmatprep.mubr.msk.bf16.mxu1 %vm2212_vm1, %v2211_v1 }
 0x245   : > { %v749_v21 = vpop.permute.xlu0 %748 }
 0x246   : > { %v754_v22 = vsel %vm700_vm3, %v749_v21, 0 }
 0x247   : > { %1700 = vmatpush3.bf16.xpose.msra.mxu0 %v754_v22 }
 0x248   : > { %1711 = vmatprep.subr.bf16.mxu0 %v2211_v1 }
 0x249   : > { %v798_v23 = vpop.permute.xlu1 %797  ;;  %v847_v25 = vpop.permute.xlu0 %846 }
 0x24a   : > { %v803_v24 = vsel %vm700_vm3, %v798_v23, 0  ;;  %v852_v26 = vsel %vm700_vm3, %v847_v25, 0 }
 0x24b   : > { %1706 = vmatpush3.bf16.xpose.msra.mxu1 %v803_v24 }
 0x24c   : > { %1717 = vmatprep.subr.bf16.mxu1 %v2211_v1 }
 0x24e   : > { %1702 = vmatmul.mubr.msk.bf16.vlgmr.msra.gmra.mxu0 %vm700_vm3, %v687_v15 }
 0x24f   : > { %1712 = vmatpush3.bf16.xpose.msra.mxu0 %v852_v26  ;;  %1713 = vmatprep.mubr.msk.bf16.mxu0 %vm2212_vm1, %v2211_v1 }
 0x250   : > { %1723 = vmatprep.subr.bf16.mxu0 %v2211_v1 }
 0x252   : > { %1708 = vmatmul.mubr.msk.bf16.vlgmr.msra.gmra.mxu1 %vm700_vm3, %v2528_v19 }
 0x253   : > { %1719 = vmatprep.mubr.msk.bf16.mxu1 %vm2212_vm1, %v2211_v1 }
 0x256   : > { %1714 = vmatmul.mubr.msk.bf16.vlgmr.msra.gmra.mxu0 %vm700_vm3, %v2526_v18 }
 0x257   : > { %1725 = vmatprep.mubr.msk.bf16.mxu0 %vm2212_vm1, %v2211_v1 }
 0x29d   : > { %v741_v28 = vpop.f32.mrf.mxu1 }
 0x29e   : > { %v742_v29 = vadd.f32 %v1621_v27, %v741_v28 }
 0x29f   : > { %v1697_v30 = vpop.f32.mrf.mxu1 }
 0x2a0   : > { %v894_v31 = vsel %vm700_vm3, %v742_v29, -inf }
 0x2a1   : > { %895 = vmax.xlane.f32.xlu1 %v894_v31  ;;  %v744_v32 = vpop.f32.mrf.mxu1 }
 0x2a3   : > { %v1698_v33 = vpop.f32.mrf.mxu1 }
 0x30e   : > { %v790_v34 = vpop.f32.mrf.mxu0 }
 0x30f   : > { %v791_v35 = vadd.f32 %v1621_v27, %v790_v34 }
 0x310   : > { %v1703_v36 = vpop.f32.mrf.mxu0 }
 0x311   : > { %v897_v37 = vsel %vm700_vm3, %v791_v35, -inf }
 0x312   : > { %v839_v38 = vpop.f32.mrf.mxu1  ;;  %898 = vmax.xlane.f32.xlu0 %v897_v37  ;;  %v793_v39 = vpop.f32.mrf.mxu0 }
 0x313   : > { %v840_v40 = vadd.f32 %v1621_v27, %v839_v38  ;;  %v1903_v38 = vld [vmem:[%s606_s8 + $0x8] sm:$0xff]   ;;  %v1904_v39 = vld [vmem:[%s606_s8] sm:$0xff]   ;;  %s1254_s8 = scalar_lea.vmem %s2697_s9, %s2185_s16 }
 0x314   : > { %v1704_v41 = vpop.f32.mrf.mxu0  ;;  %v1709_v42 = vpop.f32.mrf.mxu1 }
 0x315   : > { %v900_v43 = vsel %vm700_vm3, %v840_v40, -inf }
 0x316   : > { %v842_v44 = vpop.f32.mrf.mxu1  ;;  %901 = vmax.xlane.f32.xlu0 %v900_v43  ;;  %v888_v45 = vpop.f32.mrf.mxu0 }
 0x317   : > { %v889_v46 = vadd.f32 %v1621_v27, %v888_v45 }
 0x318   : > { %v1710_v47 = vpop.f32.mrf.mxu1  ;;  %v1715_v48 = vpop.f32.mrf.mxu0 }
 0x319   : > { %v903_v49 = vsel %vm700_vm3, %v889_v46, -inf }
 0x31a   : > { %904 = vmax.xlane.f32.xlu1 %v903_v49  ;;  %v891_v50 = vpop.f32.mrf.mxu0 }
 0x31c   : > { %v1716_v51 = vpop.f32.mrf.mxu0 }
 0x32a   : > { %v896_v52 = vpop.xlane.xlu1 %895 }
 0x32b   : > { %991 = vrot.lane.b32.xlu1 %v687_v15, %s2217_s12  ;;  %v906_v53 = vsub.f32 %v742_v29, %v896_v52 }
 0x32c   : > { %942 = vrot.lane.b32.xlu0 %v2523_v11, %s2217_s12 }
 0x32d   : > { %v910_v54 = vmul.f32 1.442695, %v906_v53 }
 0x32f   : > { %1909 = vpow2.f32 %v910_v54 }
 0x33c   : > { %v1910_v55 = vpop.eup %1909 }
 0x33d   : > { %v918_v56 = vsel %vm700_vm3, %v1910_v55, 0.0 }
 0x34b   : > { %919 = vadd.xlane.f32.xlu0 %v918_v56 }
 0x39b   : > { %v899_v57 = vpop.xlane.xlu0 %898 }
 0x39c   : > { %v907_v58 = vsub.f32 %v791_v35, %v899_v57 }
 0x39e   : > { %v912_v59 = vmul.f32 1.442695, %v907_v58 }
 0x39f   : > { %v902_v60 = vpop.xlane.xlu0 %901 }
 0x3a0   : > { %1911 = vpow2.f32 %v912_v59  ;;  %v908_v61 = vsub.f32 %v840_v40, %v902_v60  ;;  %v1630_v59 = vld [vmem:[%s611_s15] ss:$0 sm:$0xff]  ;;  %s2739_s15 = sld [smem:[#allocation35_spill]] }
 0x3a2   : > { %v914_v62 = vmul.f32 1.442695, %v908_v61 }
 0x3a3   : > { %v943_v63 = vpop.permute.xlu0 %942  ;;  %v905_v0 = vpop.xlane.xlu1 %904 }
 0x3a4   : > { %1913 = vpow2.f32 %v914_v62  ;;  %v949_v2 = vsel %vm947_vm4, %v943_v63, 0  ;;  %v909_v3 = vsub.f32 %v889_v46, %v905_v0 }
 0x3a5   : > { %1718 = vmatpush3.bf16.msra.mxu1 %v949_v2 }
 0x3a6   : > { %v916_v5 = vmul.f32 1.442695, %v909_v3  ;;  %1729 = vmatprep.subr.bf16.mxu1 %v2211_v1 }
 0x3a7   : > { %v992_v6 = vpop.permute.xlu1 %991 }
 0x3a8   : > { %1915 = vpow2.f32 %v916_v5  ;;  %v997_v7 = vsel %vm947_vm4, %v992_v6, 0 }
 0x3a9   : > { %1724 = vmatpush3.bf16.msra.mxu0 %v997_v7 }
 0x3aa   : > { %1735 = vmatprep.subr.bf16.mxu0 %v2211_v1 }
 0x3ad   : > { %v1912_v8 = vpop.eup %1911 }
 0x3ae   : > { %v921_v9 = vsel %vm700_vm3, %v1912_v8, 0.0 }
 0x3af   : > { %922 = vadd.xlane.f32.xlu1 %v921_v9 }
 0x3b1   : > { %v1914_v10 = vpop.eup %1913 }
 0x3b2   : > { %v924_v11 = vsel %vm700_vm3, %v1914_v10, 0.0 }
 0x3b3   : > { %925 = vadd.xlane.f32.xlu0 %v924_v11  ;;  %v1906_v11 = vld [vmem:[%s1249_s22] sm:$0xff]  }
 0x3b5   : > { %v1916_v12 = vpop.eup %1915 }
 0x3b6   : > { %v927_v13 = vsel %vm700_vm3, %v1916_v12, 0.0 }
 0x3b7   : > { %928 = vadd.xlane.f32.xlu1 %v927_v13 }
 0x3c8   : > { %1039 = vrot.lane.b32.xlu1 %v2528_v19, %s2217_s12 }
 0x3c9   : > { %1087 = vrot.lane.b32.xlu0 %v2526_v18, %s2217_s12 }
 0x3d4   : > { %v920_v14 = vpop.xlane.xlu0 %919 }
 0x3d5   : > { %1917 = vrcp.f32 %v920_v14 }
 0x3e2   : > { %v1918_v15 = vpop.eup %1917 }
 0x3e3   : > { %v934_v16 = vmul.f32 %v1918_v15, %v1910_v55  ;;  %v1634_v15 = vld [vmem:[%s1215_s25] ss:$0 sm:$0xff]  ;;  %s2740_s25 = sld [smem:[#allocation36_spill]] }
 0x3e5   : > { %v938_v17 = vpack.c.bf16 %v934_v16, %v934_v16 }
 0x3e7   : > { %1720 = vmatmul.mubr.msk.bf16.vlgmr.msra.gmra.mxu1 %vm700_vm3, %v938_v17  ;;  %v1635_v17 = vld [vmem:[%s1217_s14] ss:$0 sm:$0xff] }
 0x3e8   : > { %1731 = vmatprep.mubr.msk.bf16.mxu1 %vm2212_vm1, %v2211_v1 }
 0x3e9   : > { %s1391_s27 = scalar_lea.vmem %s2740_s25, %s2185_s16 }
 0x438   : > { %v923_v20 = vpop.xlane.xlu1 %922 }
 0x439   : > { %1919 = vrcp.f32 %v923_v20 }
 0x43c   : > { %v926_v21 = vpop.xlane.xlu0 %925 }
 0x43d   : > { %1921 = vrcp.f32 %v926_v21 }
 0x440   : > { %v929_v22 = vpop.xlane.xlu1 %928  ;;  %v1088_v25 = vpop.permute.xlu0 %1087 }
 0x441   : > { %1923 = vrcp.f32 %v929_v22  ;;  %v1093_v28 = vsel %vm947_vm4, %v1088_v25, 0 }
 0x444   : > { %v1040_v19 = vpop.permute.xlu1 %1039 }
 0x445   : > { %v1045_v23 = vsel %vm947_vm4, %v1040_v19, 0  ;;  %v1907_v19 = vld [vmem:[%s1320_s17 + $0x8] sm:$0xff]  }
 0x446   : > { %v1920_v18 = vpop.eup %1919  ;;  %1730 = vmatpush3.bf16.msra.mxu1 %v1045_v23  ;;  %v1908_v23 = vld [vmem:[%s1320_s17] sm:$0xff]  }
 0x447   : > { %v935_v24 = vmul.f32 %v1920_v18, %v1912_v8  ;;  %1741 = vmatprep.subr.bf16.mxu1 %v2211_v1  ;;  %v1637_v18 = vld [vmem:[%s1254_s8] ss:$0 sm:$0xff] }
 0x449   : > { %v939_v26 = vpack.c.bf16 %v935_v24, %v935_v24 }
 0x44a   : > { %v1922_v27 = vpop.eup %1921 }
 0x44b   : > { %1726 = vmatmul.mubr.msk.bf16.vlgmr.msra.gmra.mxu0 %vm700_vm3, %v939_v26  ;;  %v936_v29 = vmul.f32 %v1922_v27, %v1914_v10  ;;  %v1905_v10 = vld [vmem:[%s1249_s22 + $0x8] sm:$0xff]   ;;  %s1389_s22 = scalar_lea.vmem %s2739_s15, %s2185_s16 }
 0x44c   : > { %1736 = vmatpush3.bf16.msra.mxu0 %v1093_v28  ;;  %1737 = vmatprep.mubr.msk.bf16.mxu0 %vm2212_vm1, %v2211_v1 }
 0x44d   : > { %v940_v30 = vpack.c.bf16 %v936_v29, %v936_v29  ;;  %1749 = vmatprep.subr.bf16.mxu0 %v2211_v1 }
 0x44e   : > { %v1924_v31 = vpop.eup %1923 }
 0x44f   : > { %1732 = vmatmul.mubr.msk.bf16.vlgmr.msra.gmra.mxu1 %vm700_vm3, %v940_v30  ;;  %v937_v32 = vmul.f32 %v1924_v31, %v1916_v12 }
 0x450   : > { %1745 = vmatprep.mubr.msk.bf16.mxu1 %vm2212_vm1, %v2211_v1  ;;  %1742 = vmatpush3.bf16.msra.mxu1 %v1903_v38 }
 0x451   : > { %v941_v33 = vpack.c.bf16 %v937_v32, %v937_v32  ;;  %1743 = vmatprep.subr.bf16.mxu1 %v2211_v1 }
 0x453   : > { %1738 = vmatmul.mubr.msk.bf16.vlgmr.msra.gmra.mxu0 %vm700_vm3, %v941_v33 }
 0x454   : > { %1753 = vmatprep.mubr.msk.bf16.mxu0 %vm2212_vm1, %v2211_v1  ;;  %1744 = vmatpush3.bf16.msra.mxu1 %v1904_v39 }
 0x455   : > { %1757 = vmatprep.subr.bf16.mxu1 %v2211_v1  ;;  %1750 = vmatpush3.bf16.msra.mxu0 %v1905_v10 }
 0x456   : > { %1751 = vmatprep.subr.bf16.mxu0 %v2211_v1 }
 0x459   : > { %1752 = vmatpush3.bf16.msra.mxu0 %v1906_v11 }
 0x4a7   : > { %v985_v34 = vpop.f32.mrf.mxu1 }
 0x4a9   : > { %v1721_v35 = vpop.f32.mrf.mxu1 }
 0x4ab   : > { %v988_v36 = vpop.f32.mrf.mxu1 }
 0x4ad   : > { %v1722_v37 = vpop.f32.mrf.mxu1 }
 0x50b   : > { %v1033_v40 = vpop.f32.mrf.mxu0 }
 0x50c   : > { %1136 = vrot.lane.b32.xlu1 %v1033_v40, %s2218_s13 }
 0x50d   : > { %v1727_v41 = vpop.f32.mrf.mxu0 }
 0x50f   : > { %v1036_v42 = vpop.f32.mrf.mxu0  ;;  %v1081_v43 = vpop.f32.mrf.mxu1 }
 0x510   : > { %1140 = vrot.lane.b32.xlu0 %v1081_v43, %s2219_s10  ;;  %s2738_s10 = sld [smem:[#allocation34_spill]] }
 0x511   : > { %v1728_v44 = vpop.f32.mrf.mxu0  ;;  %v1733_v45 = vpop.f32.mrf.mxu1 }
 0x513   : > { %v1084_v46 = vpop.f32.mrf.mxu1  ;;  %v1129_v47 = vpop.f32.mrf.mxu0 }
 0x514   : > { %1144 = vrot.lane.b32.xlu1 %v1129_v47, %s2220_s18  ;;  %v1646_v47 = vld [vmem:[%s1389_s22] ss:$0 sm:$0xff] }
 0x515   : > { %v1734_v48 = vpop.f32.mrf.mxu1  ;;  %v1739_v49 = vpop.f32.mrf.mxu0 }
 0x516   : > { %s1325_s18 = scalar_lea.vmem %s2738_s10, %s2185_s16  ;;  %v1647_v49 = vld [vmem:[%s1391_s27] ss:$0 sm:$0xff] }
 0x517   : > { %v1132_v50 = vpop.f32.mrf.mxu0 }
 0x519   : > { %v1740_v51 = vpop.f32.mrf.mxu0 }
 0x57e   : > { %v1137_v52 = vpop.permute.xlu1 %1136 }
 0x57f   : > { %v1147_v54 = vsel %vm700_vm3, %v985_v34, %v1137_v52 }
 0x582   : > { %v1141_v53 = vpop.permute.xlu0 %1140 }
 0x583   : > { %v1149_v55 = vsel %vm1148_vm5, %v1147_v54, %v1141_v53 }
 0x586   : > { %v1145_v56 = vpop.permute.xlu1 %1144 }
 0x587   : > { %v1151_v57 = vsel %vm1150_vm6, %v1149_v55, %v1145_v56 }
 0x588   : > { %v1152_v58 = vpack.c.bf16 %v1151_v57, %v1151_v57 }
 0x58a   : > { %1746 = vmatmul.mubr.msk.bf16.vlgmr.msra.gmra.mxu1 %vm632_vm2, %v1152_v58 }
 0x58b   : > { %1761 = vmatprep.mubr.msk.bf16.mxu1 %vm2212_vm1, %v2211_v1  ;;  %1758 = vmatpush3.bf16.msra.mxu1 %v1907_v19 }
 0x58c   : > { %1759 = vmatprep.subr.bf16.mxu1 %v2211_v1  ;;  %v1642_v1 = vld [vmem:[%s1325_s18] ss:$0 sm:$0xff] }
 0x58f   : > { %1760 = vmatpush3.bf16.msra.mxu1 %v1908_v23 }
 0x64a   : > { %v1208_v60 = vpop.f32.mrf.mxu1 }
 0x64b   : > { %v1209_v61 = vadd.f32 %v1630_v59, %v1208_v60 }
 0x64c   : > { %v1747_v62 = vpop.f32.mrf.mxu1 }
 0x64d   : > { %v1214_v63 = vadd.f32 %v1209_v61, %v2510_v4 }
 0x64e   : > { %v1211_v0 = vpop.f32.mrf.mxu1 }
 0x64f   : > { %v1219_v2 = vsel %vm632_vm2, %v1214_v63, 0.0 }
 0x650   : > { %1220 = vadd.xlane.f32.xlu0 %v1219_v2  ;;  %v1748_v3 = vpop.f32.mrf.mxu1 }
 0x6d9   : > { %v1221_v5 = vpop.xlane.xlu0 %1220 }
 0x6da   : > { %v1223_v6 = vmul.f32 0.03125, %v1221_v5 }
 0x6dc   : > { %v1224_v7 = vsub.f32 %v1214_v63, %v1223_v6 }
 0x6de   : > { %v1225_v8 = vmul.f32 %v1224_v7, %v1224_v7 }
 0x6e0   : > { %v1226_v9 = vsel %vm632_vm2, %v1225_v8, 0.0 }
 0x6e1   : > { %1227 = vadd.xlane.f32.xlu1 %v1226_v9 }
 0x76a   : > { %v1228_v4 = vpop.xlane.xlu1 %1227 }
 0x76b   : > { %v1229_v12 = vmul.f32 0.03125, %v1228_v4 }
 0x76d   : > { %v1230_v13 = vadd.f32 1e-05, %v1229_v12 }
 0x76f   : > { %1925 = vrsqrt.f32 %v1230_v13 }
 0x77c   : > { %v1926_v14 = vpop.eup %1925 }
 0x77d   : > { %v1232_v16 = vmul.f32 %v1926_v14, %v1224_v7 }
 0x77f   : > { %v1239_v20 = vmul.f32 %v1634_v15, %v1232_v16 }
 0x781   : > { %v1246_v21 = vadd.f32 %v1635_v17, %v1239_v20 }
 0x783   : > { %v1247_v22 = vpack.c.bf16 %v1246_v21, %v1246_v21 }
 0x785   : > { %1754 = vmatmul.mubr.msk.bf16.vlgmr.msra.gmra.mxu0 %vm632_vm2, %v1247_v22 }
 0x845   : > { %v1311_v24 = vpop.f32.mrf.mxu0 }
 0x846   : > { %v1312_v25 = vadd.f32 %v1637_v18, %v1311_v24 }
 0x847   : > { %v1755_v26 = vpop.f32.mrf.mxu0 }
 0x848   : > { %v1317_v27 = vmax.f32 %v1312_v25, 0.0 }
 0x849   : > { %v1314_v28 = vpop.f32.mrf.mxu0 }
 0x84a   : > { %v1318_v29 = vpack.c.bf16 %v1317_v27, %v1317_v27 }
 0x84b   : > { %v1756_v30 = vpop.f32.mrf.mxu0 }
 0x84c   : > { %1762 = vmatmul.mubr.msk.bf16.vlgmr.msra.gmra.mxu1 %vm632_vm2, %v1318_v29 }
 0x90c   : > { %v1382_v31 = vpop.f32.mrf.mxu1 }
 0x90d   : > { %v1383_v32 = vadd.f32 %v1642_v1, %v1382_v31 }
 0x90e   : > { %v1763_v33 = vpop.f32.mrf.mxu1 }
 0x90f   : > { %v1388_v34 = vadd.f32 %v1383_v32, %v1246_v21 }
 0x910   : > { %v1385_v35 = vpop.f32.mrf.mxu1 }
 0x911   : > { %v1393_v36 = vsel %vm632_vm2, %v1388_v34, 0.0 }
 0x912   : > { %1394 = vadd.xlane.f32.xlu0 %v1393_v36  ;;  %v1764_v37 = vpop.f32.mrf.mxu1 }
 0x99b   : > { %v1395_v38 = vpop.xlane.xlu0 %1394 }
 0x99c   : > { %v1396_v39 = vmul.f32 0.03125, %v1395_v38 }
 0x99e   : > { %v1397_v40 = vsub.f32 %v1388_v34, %v1396_v39 }
 0x9a0   : > { %v1398_v41 = vmul.f32 %v1397_v40, %v1397_v40 }
 0x9a2   : > { %v1399_v42 = vsel %vm632_vm2, %v1398_v41, 0.0 }
 0x9a3   : > { %1400 = vadd.xlane.f32.xlu0 %v1399_v42 }
 0xa2c   : > { %v1401_v43 = vpop.xlane.xlu0 %1400 }
 0xa2d   : > { %v1402_v44 = vmul.f32 0.03125, %v1401_v43 }
 0xa2f   : > { %v1403_v45 = vadd.f32 1e-05, %v1402_v44 }
 0xa31   : > { %1927 = vrsqrt.f32 %v1403_v45 }
 0xa3e   : > { %v1928_v46 = vpop.eup %1927 }
 0xa3f   : > { %v1405_v48 = vmul.f32 %v1928_v46, %v1397_v40 }
 0xa41   : > { %v1412_v50 = vmul.f32 %v1646_v47, %v1405_v48  ;;  %1424 = sbr.rel (%p1648_p1) target bundleno = 2631 (0xa47), region = 108 }
 0xa43   : > { %v1419_v51 = vadd.f32 %v1647_v49, %v1412_v50 }
 0xa45   : > { %1420 = vst.msk [vmem:[#allocation2] sm:$0xff] %vm632_vm2, %v1419_v51 }
 0xa46   : > { %1425 = vst.msk [vmem:[%s2497_s11] sm:$0xff] %vm632_vm2, %v1419_v51 }
 0xa47 PF: > { %s2741_s23 = sld [smem:[#allocation23_spill]]  ;;  %s1440_s26 = sshll.u32 %s2497_s11, 4  ;;  %s1441_s26 = int_to_ptr.vmem [resolvable:$true] %s1440_s26 }
 0xa48   : > { %s2742_s12 = sld [smem:[#allocation37_spill]]  ;;  %s1427_s13 = scalar_lea.sflag [#allocation5], %s2471_s2 }
 0xa49   : > { %s2089_s10 = scalar_lea.vmem %s1441_s26, 128  ;;  %s2221_s16 = smov [#allocation14]  }
 0xa4a   : > { %p2090_p5 = scmp.ne.s32.totalorder %s1441_s26, %s2089_s10  ;;  %s2093_s18 = sshll.u32 %s2221_s16, 4  ;;  %s2094_s18 = int_to_ptr.vmem [resolvable:$false] %s2093_s18 }
 0xa4b   : > { %s2095_s0 = scalar_lea.vmem %s2094_s18, 256  ;;  %p2096_p7 = scmp.lt.s32.totalorder %s1441_s26, %s2094_s18 }
 0xa4c   : > { %p2091_p2 = pnand %p2090_p5, %p2426_p11  ;;  %p2097_p8 = scmp.lt.s32.totalorder %s2095_s0, %s2089_s10 }
 0xa4d   : > { %s1650_s14 = sshll.u32 %s2741_s23, 7 }
 0xa4e   : > { %s1438_s8 = scalar_lea.hbm %s2742_s12, %s1650_s14  ;;  %p2092_p4 = pneg %p2091_p2 }
 0xa4f   : > { %p2098_p9 = por %p2097_p8, %p2096_p7 }
 0xa51   : > { %p2099_p10 = pnand %p2098_p9, %p2092_p4 }
 0xa53   : > { %2102 = shalt.err (!%p2099_p10)
}
 0xa54   : > { %s2103_s29 = scalar_lea.hbm %s1438_s8, 128  ;;  %s2107_s15 = scalar_lea.hbm %s2742_s12, 256 }
 0xa55   : > { %p2104_p12 = scmp.ne.s32.totalorder %s1438_s8, %s2103_s29  ;;  %p2108_p3 = scmp.lt.s32.totalorder %s1438_s8, %s2742_s12 }
 0xa56   : > { %p2109_p1 = scmp.lt.s32.totalorder %s2107_s15, %s2103_s29 }
 0xa57   : > { %p2105_p13 = pnand %p2104_p12, %p2426_p11 }
 0xa58   : > { %p2110_p5 = por %p2109_p1, %p2108_p3 }
 0xa59   : > { %p2106_p0 = pneg %p2105_p13 }
 0xa5b   : > { %p2111_p2 = pnand %p2110_p5, %p2106_p0 }
 0xa5d   : > { %2114 = shalt.err (!%p2111_p2)
}
 0xa5e   : > { %1785 = dma.vmem_to_hbm [thread:$0]  (%p2426_p11), %s1441_s26, 128, %s1438_s8, %s1427_s13  }
 0xa5f PF: > { %s2743_s28 = sld [smem:[#allocation21_spill]]  ;;  %p1820_p4 = scmp.ge.s32.totalorder %s2201_s20, 2 }
 0xa61   : > { %p1808_p7 = pnand %p1820_p4, %p2433_p6 }
 0xa63   : > { %p1809_p8 = pneg %p1808_p7 }
 0xa65   : > { %s1452_s27 = sand.u32 1, %s2743_s28  }
 0xa66   : > { %s1453_s23 = scalar_lea.sflag [#allocation5], %s1452_s27 }
 0xa67   : > { %2168 = dma.done.wait (%p1809_p8), %s1453_s23, 128  }
 0xa68   : > { %2170 = vsyncadd (%p1809_p8), %s1453_s23, 4294967168  ;;  %s35_s20 = sadd.s32 1, %s2201_s20   ;;  %s2745_s14 = sld [smem:[#allocation22_spill]] }
 0xa69   : > { %p32_p9 = scmp.ge.s32.totalorder %s35_s20, 6   ;;  %s2746_s15 = sld [smem:[#allocation28_spill]] }
 0xa6a   : > { %s2747_s16 = sld [smem:[#allocation24_spill]]  ;;  %s2750_s29 = smov %s2177_s30 }
 0xa6b   : > { %s2748_s18 = sld [smem:[#allocation25_spill]]  ;;  %s2752_s17 = smov %s2197_s19 }
 0xa6c   : > { %s2749_s24 = sld [smem:[#allocation26_spill]] }
 0xa6e   : > { %s2751_s30 = smov %s2745_s14  ;;  %34 = sbr.rel (!%p32_p9) target bundleno = 21 (0x15), region = 170 }
 0xa72   : > { %s2753_s19 = smov %s2749_s24 }
 0xa73   :  { %1458 = vsyncpa [#allocation4], 1 }
 0xa74   :  { %1460 = vsyncpa [#allocation4 + $0x1], 1 }
 0xa75   :  { %1461 = vsyncpa [#allocation7], 1 }
 0xa76   :  { %1463 = vsyncpa [#allocation7 + $0x1], 1 }
 0xa77   :  { %1464 = vsyncpa [#allocation10], 1 }
 0xa78   :  { %1465 = vsyncpa [#allocation13], 1 }
 0xa79   :  { %1466 = vsyncpa [#allocation5], 1 }
 0xa7a   :  { %1468 = vsyncpa [#allocation5 + $0x1], 1 }

</bundles_post_ra>
